<compile_context>
chip_gen: v7x
topology: tpu7x:2x2x1
jax: 0.10.0
libtpu: 0.0.40
codegen_flags: <defaults>
</compile_context>

<pallas_src>
import jax
import jax.numpy as jnp
from jax.experimental import pallas as pl
from jax.experimental.pallas import tpu as pltpu

LRELU_SLOPE = 0.1
NUM_OUT = 7           # num_readout = nn.Linear(1, 7) is hard-coded in the module


def _lrelu(v):
    return jnp.where(v > 0, v, LRELU_SLOPE * v)


def _round_up(x, m):
    return (x + m - 1) // m * m


def _pick_tblk(T, cap=256):
    """Largest divisor of T not exceeding cap (keeps the recurrence exact)."""
    if T <= cap:
        return T
    for d in range(cap, 0, -1):
        if T % d == 0:
            return d
    return T


def _make_kernel(H, M, Tblk, B_pad, off_map, slab_w):
    f32 = jnp.float32

    def kernel(x_ref, h0_ref, w_emb_ref, w_cat_ref, w_map_ref, bias_ref,
               out_ref, hid_ref, comb2_scr):
        # comb2_scr is (B_pad, 2H): [:, :H] holds the per-step embedded input,
        # [:, H:] holds the hidden state, resident in VMEM across all chunks.
        @pl.when(pl.program_id(0) == 0)
        def _():
            comb2_scr[:, H:] = h0_ref[...]

        # Hoist weight loads, bias rows and the static zero pads out of the
        # timestep loop (JAX does not CSE broadcasts inside the loop body).
        w_emb = w_emb_ref[...]                 # (IN, H)   fused xy|pix embedding
        w_cat = w_cat_ref[...]                 # (2H, 2H)  [i2h | i2o] on cat(input, hidden)
        w_map = w_map_ref[...]                 # (H, M)
        b_emb = bias_ref[0:1, 0:H]             # (1, H)
        b_rnn = bias_ref[1:2, 0:2 * H]         # (1, 2H)
        b_map = bias_ref[2:3, 0:M]             # (1, M)
        w_num = bias_ref[3:4, 0:NUM_OUT]       # (1, 7)  num_readout weight row
        b_num = bias_ref[4:5, 0:NUM_OUT]       # (1, 7)
        zpad1 = jnp.zeros((B_pad, off_map - NUM_OUT), f32)
        zpad2 = jnp.zeros((B_pad, slab_w - off_map - M), f32)

        def step(i, carry):
            x_t = x_ref[i]                     # (B_pad, 2 + pix_size)

            # fused xy/pix embedding: block-diagonal weight gives exactly
            # cat(LReLU(xy_embedding(xy)), LReLU(pix_embedding(pix)))
            combined = _lrelu(
                jnp.dot(x_t, w_emb, preferred_element_type=f32) + b_emb)
            comb2_scr[:, :H] = combined

            # single RNN dot on cat(input, hidden); i2h|i2o fused along output
            pre = jnp.dot(comb2_scr[...], w_cat,
                          preferred_element_type=f32) + b_rnn     # (B, 2H)
            h_new = jnp.tanh(pre[:, :H])
            rnn_out = pre[:, H:]
            # dropout p=0 -> identity

            map_ = jnp.dot(rnn_out, w_map, preferred_element_type=f32) + b_map
            sig = jax.nn.sigmoid(map_)                            # detach=False path
            mapsum = jnp.sum(sig, axis=-1, keepdims=True)         # (B, 1)
            num = mapsum * w_num + b_num                          # Linear(1, 7) == rank-1

            comb2_scr[:, H:] = h_new

            # one lane-dense 128-wide row per step -> single unmasked store
            out_ref[i] = jnp.concatenate([num, zpad1, map_, zpad2], axis=-1)
            return carry

        jax.lax.fori_loop(0, Tblk, step, 0, unroll=True)

        # hidden is only consumed once by the wrapper; write once per chunk
        # (resident output block -> single HBM writeback at grid end).
        hid_ref[...] = comb2_scr[:, H:]

    return kernel


def _linear_params(key, in_f, out_f):
    """PyTorch nn.Linear default init; weight returned as (in, out), bias as (out,)."""
    k = 1.0 / jnp.sqrt(jnp.float32(in_f))
    kw, kb = jax.random.split(key)
    w = jax.random.uniform(kw, (in_f, out_f), jnp.float32, -k, k)
    b = jax.random.uniform(kb, (out_f,), jnp.float32, -k, k)
    return w, b


def init_params(key, pix_size, hidden_size, map_size):
    h2 = hidden_size // 2
    names_shapes = [
        ("xy_embedding", 2, h2),
        ("pix_embedding", pix_size, h2),
        # joint_embedding exists on the module but is never used in forward().
        ("rnn_i2h", 2 * hidden_size, hidden_size),
        ("rnn_i2o", 2 * hidden_size, hidden_size),
        ("map_readout", hidden_size, map_size),
        ("num_readout", 1, NUM_OUT),
    ]
    keys = jax.random.split(key, len(names_shapes))
    return {name: _linear_params(k_, fin, fout)
            for k_, (name, fin, fout) in zip(keys, names_shapes)}


def pack_params(params, *, pix_size, hidden_size, map_size):
    """One-time packing of the small Linear weights into a few VMEM-friendly slabs."""
    H, H2, M = hidden_size, hidden_size // 2, map_size
    IN = 2 + pix_size
    f32 = jnp.float32

    wxy, bxy = params["xy_embedding"]
    wpix, bpix = params["pix_embedding"]
    w_emb = jnp.zeros((IN, H), f32)
    w_emb = w_emb.at[:2, :H2].set(wxy)
    w_emb = w_emb.at[2:, H2:].set(wpix)
    b_emb = jnp.concatenate([bxy, bpix])

    wih, bih = params["rnn_i2h"]     # (2H, H)
    wio, bio = params["rnn_i2o"]     # (2H, H)
    w_cat = jnp.concatenate([wih, wio], axis=1)   # (2H, 2H): outputs [i2h | i2o]
    b_rnn = jnp.concatenate([bih, bio])

    w_map, b_map = params["map_readout"]
    w_num, b_num = params["num_readout"]          # (1, 7), (7,)

    bias_w = _round_up(max(2 * H, M, NUM_OUT), 128)
    bias_slab = jnp.zeros((8, bias_w), f32)
    bias_slab = bias_slab.at[0, :H].set(b_emb)
    bias_slab = bias_slab.at[1, :2 * H].set(b_rnn)
    bias_slab = bias_slab.at[2, :M].set(b_map)
    bias_slab = bias_slab.at[3, :NUM_OUT].set(w_num[0])
    bias_slab = bias_slab.at[4, :NUM_OUT].set(b_num)

    return dict(w_emb=w_emb, w_cat=w_cat, w_map=w_map, bias_slab=bias_slab)


def num_as_mapsum_forward(x_seq, hidden0, packed, *, hidden_size, map_size):
    """Applies NumAsMapsum2stream.forward to every timestep of x_seq (T, B, 2+pix)."""
    T, B, IN = x_seq.shape
    H, M = hidden_size, map_size

    # pad batch to a sublane multiple; pad rows are discarded on the way out
    B_pad = _round_up(B, 8)
    if B_pad != B:
        x_seq = jnp.pad(x_seq, ((0, 0), (0, B_pad - B), (0, 0)))
        hidden0 = jnp.pad(hidden0, ((0, B_pad - B), (0, 0)))

    Tblk = _pick_tblk(T)
    nchunks = T // Tblk

    off_map = _round_up(NUM_OUT, 8)
    slab_w = _round_up(off_map + M, 128)
    bias_w = packed["bias_slab"].shape[1]

    kernel = _make_kernel(H, M, Tblk, B_pad, off_map, slab_w)

    grid_spec = pltpu.PrefetchScalarGridSpec(
        num_scalar_prefetch=0,
        grid=(nchunks,),
        in_specs=[
            pl.BlockSpec((Tblk, B_pad, IN), lambda c: (c, 0, 0)),    # input chunk
            pl.BlockSpec((B_pad, H), lambda c: (0, 0)),              # initial hidden
            pl.BlockSpec((IN, H), lambda c: (0, 0)),                 # fused embedding W
            pl.BlockSpec((2 * H, 2 * H), lambda c: (0, 0)),          # fused RNN W
            pl.BlockSpec((H, M), lambda c: (0, 0)),                  # map readout W
            pl.BlockSpec((8, bias_w), lambda c: (0, 0)),             # bias slab
        ],
        out_specs=[
            pl.BlockSpec((Tblk, B_pad, slab_w), lambda c: (c, 0, 0)),  # num|map slab
            pl.BlockSpec((B_pad, H), lambda c: (0, 0)),                # final hidden
        ],
        scratch_shapes=[pltpu.VMEM((B_pad, 2 * H), jnp.float32)],
    )

    slab, hidden = pl.pallas_call(
        kernel,
        out_shape=(jax.ShapeDtypeStruct((T, B_pad, slab_w), jnp.float32),
                   jax.ShapeDtypeStruct((B_pad, H), jnp.float32)),
        grid_spec=grid_spec,
        compiler_params=pltpu.CompilerParams(
            dimension_semantics=("arbitrary",)),
    )(x_seq, hidden0, packed["w_emb"], packed["w_cat"],
      packed["w_map"], packed["bias_slab"])

    num = slab[:, :B, :NUM_OUT]                     # (T, B, 7)
    map_ = slab[:, :B, off_map:off_map + M]         # (T, B, M)
    return num, map_, hidden[:B]                    # hidden after the last step


def _reference_forward(x_seq, hidden, params):
    """Pure-JAX mirror of the PyTorch NumAsMapsum2stream.forward, applied per step."""
    def lin(a, p):
        w, b = p
        return a @ w + b

    nums, maps = [], []
    h = hidden
    for t in range(x_seq.shape[0]):
        x = x_seq[t]
        xy = _lrelu(lin(x[:, :2], params["xy_embedding"]))
        pix = _lrelu(lin(x[:, 2:], params["pix_embedding"]))
        combined = jnp.concatenate([xy, pix], axis=-1)
        comb2 = jnp.concatenate([combined, h], axis=-1)     # RNN2 (Elman assumption)
        h = jnp.tanh(lin(comb2, params["rnn_i2h"]))
        rnn_out = lin(comb2, params["rnn_i2o"])
        map_ = lin(rnn_out, params["map_readout"])          # dropout p=0 -> identity
        sig = jax.nn.sigmoid(map_)
        mapsum = jnp.sum(sig, axis=1, keepdims=True)
        num = lin(mapsum, params["num_readout"])
        nums.append(num)
        maps.append(map_)
    return jnp.stack(nums), jnp.stack(maps), h


if __name__ == "__main__":
    # small shapes consistent with the module
    B, T, PIX, H, M = 2, 8, 16, 32, 16

    key = jax.random.PRNGKey(0)
    k_par, k_x = jax.random.split(key)
    params = init_params(k_par, PIX, H, M)
    packed = pack_params(params, pix_size=PIX, hidden_size=H, map_size=M)

    x_seq = jax.random.normal(k_x, (T, B, 2 + PIX), jnp.float32)   # cat(xy, pixels) per step
    hidden0 = jnp.zeros((B, H), jnp.float32)                        # rnn.initHidden()

    num, map_, hidden = jax.block_until_ready(
        num_as_mapsum_forward(x_seq, hidden0, packed, hidden_size=H, map_size=M))

    ref_num, ref_map, ref_hidden = _reference_forward(x_seq, hidden0, params)

    for a, b in ((num, ref_num), (map_, ref_map), (hidden, ref_hidden)):
        assert a.shape == b.shape, (a.shape, b.shape)
        assert jnp.allclose(a, b, atol=1e-4, rtol=1e-4), float(jnp.max(jnp.abs(a - b)))

    print("KERNEL_OK")
</pallas_src>

<mosaic_0001>
module attributes {stable_mosaic.version = 11 : i64} {
  func.func @kernel(%arg0: i32, %arg1: memref<8x8x18xf32, #tpu.memory_space<vmem>>, %arg2: memref<8x32xf32, #tpu.memory_space<vmem>>, %arg3: memref<18x32xf32, #tpu.memory_space<vmem>>, %arg4: memref<64x64xf32, #tpu.memory_space<vmem>>, %arg5: memref<32x16xf32, #tpu.memory_space<vmem>>, %arg6: memref<8x128xf32, #tpu.memory_space<vmem>>, %arg7: memref<8x8x128xf32, #tpu.memory_space<vmem>>, %arg8: memref<8x32xf32, #tpu.memory_space<vmem>>, %arg9: memref<8x64xf32, #tpu.memory_space<vmem>>) attributes {dimension_semantics = [#tpu.dimension_semantics<arbitrary>], iteration_bounds = array<i64: 1>, scalar_prefetch = 0 : i64, scratch_operands = 1 : i64, tpu.core_type = #tpu.core_type<tc>, window_params = [{transform_indices = @transform_0, window_bounds = array<i64: 8, 8, 18>}, {pipeline_mode = #tpu.pipeline_mode<synchronous>, transform_indices = @transform_1, window_bounds = array<i64: 8, 32>}, {pipeline_mode = #tpu.pipeline_mode<synchronous>, transform_indices = @transform_2, window_bounds = array<i64: 18, 32>}, {pipeline_mode = #tpu.pipeline_mode<synchronous>, transform_indices = @transform_3, window_bounds = array<i64: 64, 64>}, {pipeline_mode = #tpu.pipeline_mode<synchronous>, transform_indices = @transform_4, window_bounds = array<i64: 32, 16>}, {pipeline_mode = #tpu.pipeline_mode<synchronous>, transform_indices = @transform_5, window_bounds = array<i64: 8, 128>}, {transform_indices = @transform_6, window_bounds = array<i64: 8, 8, 128>}, {pipeline_mode = #tpu.pipeline_mode<synchronous>, transform_indices = @transform_7, window_bounds = array<i64: 8, 32>}]} {
    %c0_i32 = arith.constant 0 : i32
    %0 = arith.cmpi eq, %arg0, %c0_i32 : i32
    %1 = arith.extui %0 : i1 to i32
    %c0_i32_0 = arith.constant 0 : i32
    %2 = arith.cmpi ne, %1, %c0_i32_0 : i32
    scf.if %2 {
      %c0_153 = arith.constant 0 : index
      %c0_154 = arith.constant 0 : index
      %335 = vector.load %arg2[%c0_153, %c0_154] : memref<8x32xf32, #tpu.memory_space<vmem>>, vector<8x32xf32>
      %c0_155 = arith.constant 0 : index
      %c32_156 = arith.constant 32 : index
      %336 = vector.load %arg9[%c0_155, %c32_156] : memref<8x64xf32, #tpu.memory_space<vmem>>, vector<8x32xf32>
      tpu.vector_store %arg9[%c0_155, %c32_156], %335 {strides = array<i32>} : memref<8x64xf32, #tpu.memory_space<vmem>>, vector<8x32xf32>,
    } else {
    }
    %c0 = arith.constant 0 : index
    %c0_1 = arith.constant 0 : index
    %3 = vector.load %arg3[%c0, %c0_1] : memref<18x32xf32, #tpu.memory_space<vmem>>, vector<18x32xf32>
    %c0_2 = arith.constant 0 : index
    %c0_3 = arith.constant 0 : index
    %4 = vector.load %arg4[%c0_2, %c0_3] : memref<64x64xf32, #tpu.memory_space<vmem>>, vector<64x64xf32>
    %c0_4 = arith.constant 0 : index
    %c0_5 = arith.constant 0 : index
    %5 = vector.load %arg5[%c0_4, %c0_5] : memref<32x16xf32, #tpu.memory_space<vmem>>, vector<32x16xf32>
    %c0_6 = arith.constant 0 : index
    %c0_7 = arith.constant 0 : index
    %6 = vector.load %arg6[%c0_6, %c0_7] : memref<8x128xf32, #tpu.memory_space<vmem>>, vector<1x32xf32>
    %c1 = arith.constant 1 : index
    %c0_8 = arith.constant 0 : index
    %7 = vector.load %arg6[%c1, %c0_8] : memref<8x128xf32, #tpu.memory_space<vmem>>, vector<1x64xf32>
    %c2 = arith.constant 2 : index
    %c0_9 = arith.constant 0 : index
    %8 = vector.load %arg6[%c2, %c0_9] : memref<8x128xf32, #tpu.memory_space<vmem>>, vector<1x16xf32>
    %c3 = arith.constant 3 : index
    %c0_10 = arith.constant 0 : index
    %9 = vector.load %arg6[%c3, %c0_10] : memref<8x128xf32, #tpu.memory_space<vmem>>, vector<1x7xf32>
    %c4 = arith.constant 4 : index
    %c0_11 = arith.constant 0 : index
    %10 = vector.load %arg6[%c4, %c0_11] : memref<8x128xf32, #tpu.memory_space<vmem>>, vector<1x7xf32>
    %cst = arith.constant 0.000000e+00 : f32
    %11 = vector.broadcast %cst : f32 to vector<8x1xf32>
    %cst_12 = arith.constant 0.000000e+00 : f32
    %12 = vector.broadcast %cst_12 : f32 to vector<8x104xf32>
    %c0_i32_13 = arith.constant 0 : i32
    %13 = arith.index_cast %c0_i32_13 : i32 to index
    %c0_14 = arith.constant 0 : index
    %c0_15 = arith.constant 0 : index
    %14 = vector.load %arg1[%13, %c0_14, %c0_15] : memref<8x8x18xf32, #tpu.memory_space<vmem>>, vector<1x8x18xf32>
    %15 = vector.shape_cast %14 : vector<1x8x18xf32> to vector<8x18xf32>
    %cst_16 = arith.constant dense<0.000000e+00> : vector<8x32xf32>
    %16 = tpu.matmul %15, %3, %cst_16 {dimension_numbers = #tpu.dot_dimension_numbers<[1], [0], [0], [1], [0, 0, 1, 1], [], []>} : vector<8x18xf32>, vector<18x32xf32>, vector<8x32xf32> -> vector<8x32xf32>
    %17 = vector.broadcast %6 : vector<1x32xf32> to vector<8x32xf32>
    %18 = arith.addf %16, %17 : vector<8x32xf32>
    %cst_17 = arith.constant 0.000000e+00 : f32
    %19 = vector.broadcast %cst_17 : f32 to vector<8x32xf32>
    %20 = arith.cmpf ogt, %18, %19 : vector<8x32xf32>
    %cst_18 = arith.constant 1.000000e-01 : f32
    %21 = vector.broadcast %cst_18 : f32 to vector<8x32xf32>
    %22 = arith.mulf %21, %18 : vector<8x32xf32>
    %23 = arith.select %20, %18, %22 : vector<8x32xi1>, vector<8x32xf32>
    %c0_19 = arith.constant 0 : index
    %c0_20 = arith.constant 0 : index
    %24 = vector.load %arg9[%c0_19, %c0_20] : memref<8x64xf32, #tpu.memory_space<vmem>>, vector<8x32xf32>
    tpu.vector_store %arg9[%c0_19, %c0_20], %23 {strides = array<i32>} : memref<8x64xf32, #tpu.memory_space<vmem>>, vector<8x32xf32>,
    %c0_21 = arith.constant 0 : index
    %c0_22 = arith.constant 0 : index
    %25 = vector.load %arg9[%c0_21, %c0_22] : memref<8x64xf32, #tpu.memory_space<vmem>>, vector<8x64xf32>
    %cst_23 = arith.constant dense<0.000000e+00> : vector<8x64xf32>
    %26 = tpu.matmul %25, %4, %cst_23 {dimension_numbers = #tpu.dot_dimension_numbers<[1], [0], [0], [1], [0, 0, 1, 1], [], []>} : vector<8x64xf32>, vector<64x64xf32>, vector<8x64xf32> -> vector<8x64xf32>
    %27 = vector.broadcast %7 : vector<1x64xf32> to vector<8x64xf32>
    %28 = arith.addf %26, %27 : vector<8x64xf32>
    %29 = vector.extract_strided_slice %28 {offsets = [0, 0], sizes = [8, 32], strides = [1, 1]} : vector<8x64xf32> to vector<8x32xf32>
    %30 = math.tanh %29 : vector<8x32xf32>
    %31 = vector.extract_strided_slice %28 {offsets = [0, 32], sizes = [8, 32], strides = [1, 1]} : vector<8x64xf32> to vector<8x32xf32>
    %cst_24 = arith.constant dense<0.000000e+00> : vector<8x16xf32>
    %32 = tpu.matmul %31, %5, %cst_24 {dimension_numbers = #tpu.dot_dimension_numbers<[1], [0], [0], [1], [0, 0, 1, 1], [], []>} : vector<8x32xf32>, vector<32x16xf32>, vector<8x16xf32> -> vector<8x16xf32>
    %33 = vector.broadcast %8 : vector<1x16xf32> to vector<8x16xf32>
    %34 = arith.addf %32, %33 : vector<8x16xf32>
    %35 = arith.negf %34 : vector<8x16xf32>
    %36 = math.exp %35 : vector<8x16xf32>
    %cst_25 = arith.constant 1.000000e+00 : f32
    %37 = vector.broadcast %cst_25 : f32 to vector<8x16xf32>
    %38 = arith.addf %37, %36 : vector<8x16xf32>
    %39 = arith.divf %37, %38 : vector<8x16xf32>
    %cst_26 = arith.constant dense<0.000000e+00> : vector<8xf32>
    %40 = vector.multi_reduction <add>, %39, %cst_26 [1] : vector<8x16xf32> to vector<8xf32>
    %41 = vector.shape_cast %40 : vector<8xf32> to vector<8x1xf32>
    %42 = vector.broadcast %41 : vector<8x1xf32> to vector<8x7xf32>
    %43 = vector.broadcast %9 : vector<1x7xf32> to vector<8x7xf32>
    %44 = arith.mulf %42, %43 : vector<8x7xf32>
    %45 = vector.broadcast %10 : vector<1x7xf32> to vector<8x7xf32>
    %46 = arith.addf %44, %45 : vector<8x7xf32>
    %c0_27 = arith.constant 0 : index
    %c32 = arith.constant 32 : index
    %47 = vector.load %arg9[%c0_27, %c32] : memref<8x64xf32, #tpu.memory_space<vmem>>, vector<8x32xf32>
    tpu.vector_store %arg9[%c0_27, %c32], %30 {strides = array<i32>} : memref<8x64xf32, #tpu.memory_space<vmem>>, vector<8x32xf32>,
    %48 = tpu.concatenate %46, %11, %34, %12 in 1 : vector<8x7xf32>, vector<8x1xf32>, vector<8x16xf32>, vector<8x104xf32> -> vector<8x128xf32>
    %49 = arith.index_cast %c0_i32_13 : i32 to index
    %c0_28 = arith.constant 0 : index
    %c0_29 = arith.constant 0 : index
    %50 = vector.load %arg7[%49, %c0_28, %c0_29] : memref<8x8x128xf32, #tpu.memory_space<vmem>>, vector<1x8x128xf32>
    %51 = vector.shape_cast %50 : vector<1x8x128xf32> to vector<8x128xf32>
    %52 = vector.shape_cast %48 : vector<8x128xf32> to vector<1x8x128xf32>
    tpu.vector_store %arg7[%49, %c0_28, %c0_29], %52 {strides = array<i32>} : memref<8x8x128xf32, #tpu.memory_space<vmem>>, vector<1x8x128xf32>,
    %c1_i32 = arith.constant 1 : i32
    %53 = arith.index_cast %c1_i32 : i32 to index
    %c0_30 = arith.constant 0 : index
    %c0_31 = arith.constant 0 : index
    %54 = vector.load %arg1[%53, %c0_30, %c0_31] : memref<8x8x18xf32, #tpu.memory_space<vmem>>, vector<1x8x18xf32>
    %55 = vector.shape_cast %54 : vector<1x8x18xf32> to vector<8x18xf32>
    %cst_32 = arith.constant dense<0.000000e+00> : vector<8x32xf32>
    %56 = tpu.matmul %55, %3, %cst_32 {dimension_numbers = #tpu.dot_dimension_numbers<[1], [0], [0], [1], [0, 0, 1, 1], [], []>} : vector<8x18xf32>, vector<18x32xf32>, vector<8x32xf32> -> vector<8x32xf32>
    %57 = vector.broadcast %6 : vector<1x32xf32> to vector<8x32xf32>
    %58 = arith.addf %56, %57 : vector<8x32xf32>
    %cst_33 = arith.constant 0.000000e+00 : f32
    %59 = vector.broadcast %cst_33 : f32 to vector<8x32xf32>
    %60 = arith.cmpf ogt, %58, %59 : vector<8x32xf32>
    %cst_34 = arith.constant 1.000000e-01 : f32
    %61 = vector.broadcast %cst_34 : f32 to vector<8x32xf32>
    %62 = arith.mulf %61, %58 : vector<8x32xf32>
    %63 = arith.select %60, %58, %62 : vector<8x32xi1>, vector<8x32xf32>
    %c0_35 = arith.constant 0 : index
    %c0_36 = arith.constant 0 : index
    %64 = vector.load %arg9[%c0_35, %c0_36] : memref<8x64xf32, #tpu.memory_space<vmem>>, vector<8x32xf32>
    tpu.vector_store %arg9[%c0_35, %c0_36], %63 {strides = array<i32>} : memref<8x64xf32, #tpu.memory_space<vmem>>, vector<8x32xf32>,
    %c0_37 = arith.constant 0 : index
    %c0_38 = arith.constant 0 : index
    %65 = vector.load %arg9[%c0_37, %c0_38] : memref<8x64xf32, #tpu.memory_space<vmem>>, vector<8x64xf32>
    %cst_39 = arith.constant dense<0.000000e+00> : vector<8x64xf32>
    %66 = tpu.matmul %65, %4, %cst_39 {dimension_numbers = #tpu.dot_dimension_numbers<[1], [0], [0], [1], [0, 0, 1, 1], [], []>} : vector<8x64xf32>, vector<64x64xf32>, vector<8x64xf32> -> vector<8x64xf32>
    %67 = vector.broadcast %7 : vector<1x64xf32> to vector<8x64xf32>
    %68 = arith.addf %66, %67 : vector<8x64xf32>
    %69 = vector.extract_strided_slice %68 {offsets = [0, 0], sizes = [8, 32], strides = [1, 1]} : vector<8x64xf32> to vector<8x32xf32>
    %70 = math.tanh %69 : vector<8x32xf32>
    %71 = vector.extract_strided_slice %68 {offsets = [0, 32], sizes = [8, 32], strides = [1, 1]} : vector<8x64xf32> to vector<8x32xf32>
    %cst_40 = arith.constant dense<0.000000e+00> : vector<8x16xf32>
    %72 = tpu.matmul %71, %5, %cst_40 {dimension_numbers = #tpu.dot_dimension_numbers<[1], [0], [0], [1], [0, 0, 1, 1], [], []>} : vector<8x32xf32>, vector<32x16xf32>, vector<8x16xf32> -> vector<8x16xf32>
    %73 = vector.broadcast %8 : vector<1x16xf32> to vector<8x16xf32>
    %74 = arith.addf %72, %73 : vector<8x16xf32>
    %75 = arith.negf %74 : vector<8x16xf32>
    %76 = math.exp %75 : vector<8x16xf32>
    %cst_41 = arith.constant 1.000000e+00 : f32
    %77 = vector.broadcast %cst_41 : f32 to vector<8x16xf32>
    %78 = arith.addf %77, %76 : vector<8x16xf32>
    %79 = arith.divf %77, %78 : vector<8x16xf32>
    %cst_42 = arith.constant dense<0.000000e+00> : vector<8xf32>
    %80 = vector.multi_reduction <add>, %79, %cst_42 [1] : vector<8x16xf32> to vector<8xf32>
    %81 = vector.shape_cast %80 : vector<8xf32> to vector<8x1xf32>
    %82 = vector.broadcast %81 : vector<8x1xf32> to vector<8x7xf32>
    %83 = vector.broadcast %9 : vector<1x7xf32> to vector<8x7xf32>
    %84 = arith.mulf %82, %83 : vector<8x7xf32>
    %85 = vector.broadcast %10 : vector<1x7xf32> to vector<8x7xf32>
    %86 = arith.addf %84, %85 : vector<8x7xf32>
    %c0_43 = arith.constant 0 : index
    %c32_44 = arith.constant 32 : index
    %87 = vector.load %arg9[%c0_43, %c32_44] : memref<8x64xf32, #tpu.memory_space<vmem>>, vector<8x32xf32>
    tpu.vector_store %arg9[%c0_43, %c32_44], %70 {strides = array<i32>} : memref<8x64xf32, #tpu.memory_space<vmem>>, vector<8x32xf32>,
    %88 = tpu.concatenate %86, %11, %74, %12 in 1 : vector<8x7xf32>, vector<8x1xf32>, vector<8x16xf32>, vector<8x104xf32> -> vector<8x128xf32>
    %89 = arith.index_cast %c1_i32 : i32 to index
    %c0_45 = arith.constant 0 : index
    %c0_46 = arith.constant 0 : index
    %90 = vector.load %arg7[%89, %c0_45, %c0_46] : memref<8x8x128xf32, #tpu.memory_space<vmem>>, vector<1x8x128xf32>
    %91 = vector.shape_cast %90 : vector<1x8x128xf32> to vector<8x128xf32>
    %92 = vector.shape_cast %88 : vector<8x128xf32> to vector<1x8x128xf32>
    tpu.vector_store %arg7[%89, %c0_45, %c0_46], %92 {strides = array<i32>} : memref<8x8x128xf32, #tpu.memory_space<vmem>>, vector<1x8x128xf32>,
    %c2_i32 = arith.constant 2 : i32
    %93 = arith.index_cast %c2_i32 : i32 to index
    %c0_47 = arith.constant 0 : index
    %c0_48 = arith.constant 0 : index
    %94 = vector.load %arg1[%93, %c0_47, %c0_48] : memref<8x8x18xf32, #tpu.memory_space<vmem>>, vector<1x8x18xf32>
    %95 = vector.shape_cast %94 : vector<1x8x18xf32> to vector<8x18xf32>
    %cst_49 = arith.constant dense<0.000000e+00> : vector<8x32xf32>
    %96 = tpu.matmul %95, %3, %cst_49 {dimension_numbers = #tpu.dot_dimension_numbers<[1], [0], [0], [1], [0, 0, 1, 1], [], []>} : vector<8x18xf32>, vector<18x32xf32>, vector<8x32xf32> -> vector<8x32xf32>
    %97 = vector.broadcast %6 : vector<1x32xf32> to vector<8x32xf32>
    %98 = arith.addf %96, %97 : vector<8x32xf32>
    %cst_50 = arith.constant 0.000000e+00 : f32
    %99 = vector.broadcast %cst_50 : f32 to vector<8x32xf32>
    %100 = arith.cmpf ogt, %98, %99 : vector<8x32xf32>
    %cst_51 = arith.constant 1.000000e-01 : f32
    %101 = vector.broadcast %cst_51 : f32 to vector<8x32xf32>
    %102 = arith.mulf %101, %98 : vector<8x32xf32>
    %103 = arith.select %100, %98, %102 : vector<8x32xi1>, vector<8x32xf32>
    %c0_52 = arith.constant 0 : index
    %c0_53 = arith.constant 0 : index
    %104 = vector.load %arg9[%c0_52, %c0_53] : memref<8x64xf32, #tpu.memory_space<vmem>>, vector<8x32xf32>
    tpu.vector_store %arg9[%c0_52, %c0_53], %103 {strides = array<i32>} : memref<8x64xf32, #tpu.memory_space<vmem>>, vector<8x32xf32>,
    %c0_54 = arith.constant 0 : index
    %c0_55 = arith.constant 0 : index
    %105 = vector.load %arg9[%c0_54, %c0_55] : memref<8x64xf32, #tpu.memory_space<vmem>>, vector<8x64xf32>
    %cst_56 = arith.constant dense<0.000000e+00> : vector<8x64xf32>
    %106 = tpu.matmul %105, %4, %cst_56 {dimension_numbers = #tpu.dot_dimension_numbers<[1], [0], [0], [1], [0, 0, 1, 1], [], []>} : vector<8x64xf32>, vector<64x64xf32>, vector<8x64xf32> -> vector<8x64xf32>
    %107 = vector.broadcast %7 : vector<1x64xf32> to vector<8x64xf32>
    %108 = arith.addf %106, %107 : vector<8x64xf32>
    %109 = vector.extract_strided_slice %108 {offsets = [0, 0], sizes = [8, 32], strides = [1, 1]} : vector<8x64xf32> to vector<8x32xf32>
    %110 = math.tanh %109 : vector<8x32xf32>
    %111 = vector.extract_strided_slice %108 {offsets = [0, 32], sizes = [8, 32], strides = [1, 1]} : vector<8x64xf32> to vector<8x32xf32>
    %cst_57 = arith.constant dense<0.000000e+00> : vector<8x16xf32>
    %112 = tpu.matmul %111, %5, %cst_57 {dimension_numbers = #tpu.dot_dimension_numbers<[1], [0], [0], [1], [0, 0, 1, 1], [], []>} : vector<8x32xf32>, vector<32x16xf32>, vector<8x16xf32> -> vector<8x16xf32>
    %113 = vector.broadcast %8 : vector<1x16xf32> to vector<8x16xf32>
    %114 = arith.addf %112, %113 : vector<8x16xf32>
    %115 = arith.negf %114 : vector<8x16xf32>
    %116 = math.exp %115 : vector<8x16xf32>
    %cst_58 = arith.constant 1.000000e+00 : f32
    %117 = vector.broadcast %cst_58 : f32 to vector<8x16xf32>
    %118 = arith.addf %117, %116 : vector<8x16xf32>
    %119 = arith.divf %117, %118 : vector<8x16xf32>
    %cst_59 = arith.constant dense<0.000000e+00> : vector<8xf32>
    %120 = vector.multi_reduction <add>, %119, %cst_59 [1] : vector<8x16xf32> to vector<8xf32>
    %121 = vector.shape_cast %120 : vector<8xf32> to vector<8x1xf32>
    %122 = vector.broadcast %121 : vector<8x1xf32> to vector<8x7xf32>
    %123 = vector.broadcast %9 : vector<1x7xf32> to vector<8x7xf32>
    %124 = arith.mulf %122, %123 : vector<8x7xf32>
    %125 = vector.broadcast %10 : vector<1x7xf32> to vector<8x7xf32>
    %126 = arith.addf %124, %125 : vector<8x7xf32>
    %c0_60 = arith.constant 0 : index
    %c32_61 = arith.constant 32 : index
    %127 = vector.load %arg9[%c0_60, %c32_61] : memref<8x64xf32, #tpu.memory_space<vmem>>, vector<8x32xf32>
    tpu.vector_store %arg9[%c0_60, %c32_61], %110 {strides = array<i32>} : memref<8x64xf32, #tpu.memory_space<vmem>>, vector<8x32xf32>,
    %128 = tpu.concatenate %126, %11, %114, %12 in 1 : vector<8x7xf32>, vector<8x1xf32>, vector<8x16xf32>, vector<8x104xf32> -> vector<8x128xf32>
    %129 = arith.index_cast %c2_i32 : i32 to index
    %c0_62 = arith.constant 0 : index
    %c0_63 = arith.constant 0 : index
    %130 = vector.load %arg7[%129, %c0_62, %c0_63] : memref<8x8x128xf32, #tpu.memory_space<vmem>>, vector<1x8x128xf32>
    %131 = vector.shape_cast %130 : vector<1x8x128xf32> to vector<8x128xf32>
    %132 = vector.shape_cast %128 : vector<8x128xf32> to vector<1x8x128xf32>
    tpu.vector_store %arg7[%129, %c0_62, %c0_63], %132 {strides = array<i32>} : memref<8x8x128xf32, #tpu.memory_space<vmem>>, vector<1x8x128xf32>,
    %c3_i32 = arith.constant 3 : i32
    %133 = arith.index_cast %c3_i32 : i32 to index
    %c0_64 = arith.constant 0 : index
    %c0_65 = arith.constant 0 : index
    %134 = vector.load %arg1[%133, %c0_64, %c0_65] : memref<8x8x18xf32, #tpu.memory_space<vmem>>, vector<1x8x18xf32>
    %135 = vector.shape_cast %134 : vector<1x8x18xf32> to vector<8x18xf32>
    %cst_66 = arith.constant dense<0.000000e+00> : vector<8x32xf32>
    %136 = tpu.matmul %135, %3, %cst_66 {dimension_numbers = #tpu.dot_dimension_numbers<[1], [0], [0], [1], [0, 0, 1, 1], [], []>} : vector<8x18xf32>, vector<18x32xf32>, vector<8x32xf32> -> vector<8x32xf32>
    %137 = vector.broadcast %6 : vector<1x32xf32> to vector<8x32xf32>
    %138 = arith.addf %136, %137 : vector<8x32xf32>
    %cst_67 = arith.constant 0.000000e+00 : f32
    %139 = vector.broadcast %cst_67 : f32 to vector<8x32xf32>
    %140 = arith.cmpf ogt, %138, %139 : vector<8x32xf32>
    %cst_68 = arith.constant 1.000000e-01 : f32
    %141 = vector.broadcast %cst_68 : f32 to vector<8x32xf32>
    %142 = arith.mulf %141, %138 : vector<8x32xf32>
    %143 = arith.select %140, %138, %142 : vector<8x32xi1>, vector<8x32xf32>
    %c0_69 = arith.constant 0 : index
    %c0_70 = arith.constant 0 : index
    %144 = vector.load %arg9[%c0_69, %c0_70] : memref<8x64xf32, #tpu.memory_space<vmem>>, vector<8x32xf32>
    tpu.vector_store %arg9[%c0_69, %c0_70], %143 {strides = array<i32>} : memref<8x64xf32, #tpu.memory_space<vmem>>, vector<8x32xf32>,
    %c0_71 = arith.constant 0 : index
    %c0_72 = arith.constant 0 : index
    %145 = vector.load %arg9[%c0_71, %c0_72] : memref<8x64xf32, #tpu.memory_space<vmem>>, vector<8x64xf32>
    %cst_73 = arith.constant dense<0.000000e+00> : vector<8x64xf32>
    %146 = tpu.matmul %145, %4, %cst_73 {dimension_numbers = #tpu.dot_dimension_numbers<[1], [0], [0], [1], [0, 0, 1, 1], [], []>} : vector<8x64xf32>, vector<64x64xf32>, vector<8x64xf32> -> vector<8x64xf32>
    %147 = vector.broadcast %7 : vector<1x64xf32> to vector<8x64xf32>
    %148 = arith.addf %146, %147 : vector<8x64xf32>
    %149 = vector.extract_strided_slice %148 {offsets = [0, 0], sizes = [8, 32], strides = [1, 1]} : vector<8x64xf32> to vector<8x32xf32>
    %150 = math.tanh %149 : vector<8x32xf32>
    %151 = vector.extract_strided_slice %148 {offsets = [0, 32], sizes = [8, 32], strides = [1, 1]} : vector<8x64xf32> to vector<8x32xf32>
    %cst_74 = arith.constant dense<0.000000e+00> : vector<8x16xf32>
    %152 = tpu.matmul %151, %5, %cst_74 {dimension_numbers = #tpu.dot_dimension_numbers<[1], [0], [0], [1], [0, 0, 1, 1], [], []>} : vector<8x32xf32>, vector<32x16xf32>, vector<8x16xf32> -> vector<8x16xf32>
    %153 = vector.broadcast %8 : vector<1x16xf32> to vector<8x16xf32>
    %154 = arith.addf %152, %153 : vector<8x16xf32>
    %155 = arith.negf %154 : vector<8x16xf32>
    %156 = math.exp %155 : vector<8x16xf32>
    %cst_75 = arith.constant 1.000000e+00 : f32
    %157 = vector.broadcast %cst_75 : f32 to vector<8x16xf32>
    %158 = arith.addf %157, %156 : vector<8x16xf32>
    %159 = arith.divf %157, %158 : vector<8x16xf32>
    %cst_76 = arith.constant dense<0.000000e+00> : vector<8xf32>
    %160 = vector.multi_reduction <add>, %159, %cst_76 [1] : vector<8x16xf32> to vector<8xf32>
    %161 = vector.shape_cast %160 : vector<8xf32> to vector<8x1xf32>
    %162 = vector.broadcast %161 : vector<8x1xf32> to vector<8x7xf32>
    %163 = vector.broadcast %9 : vector<1x7xf32> to vector<8x7xf32>
    %164 = arith.mulf %162, %163 : vector<8x7xf32>
    %165 = vector.broadcast %10 : vector<1x7xf32> to vector<8x7xf32>
    %166 = arith.addf %164, %165 : vector<8x7xf32>
    %c0_77 = arith.constant 0 : index
    %c32_78 = arith.constant 32 : index
    %167 = vector.load %arg9[%c0_77, %c32_78] : memref<8x64xf32, #tpu.memory_space<vmem>>, vector<8x32xf32>
    tpu.vector_store %arg9[%c0_77, %c32_78], %150 {strides = array<i32>} : memref<8x64xf32, #tpu.memory_space<vmem>>, vector<8x32xf32>,
    %168 = tpu.concatenate %166, %11, %154, %12 in 1 : vector<8x7xf32>, vector<8x1xf32>, vector<8x16xf32>, vector<8x104xf32> -> vector<8x128xf32>
    %169 = arith.index_cast %c3_i32 : i32 to index
    %c0_79 = arith.constant 0 : index
    %c0_80 = arith.constant 0 : index
    %170 = vector.load %arg7[%169, %c0_79, %c0_80] : memref<8x8x128xf32, #tpu.memory_space<vmem>>, vector<1x8x128xf32>
    %171 = vector.shape_cast %170 : vector<1x8x128xf32> to vector<8x128xf32>
    %172 = vector.shape_cast %168 : vector<8x128xf32> to vector<1x8x128xf32>
    tpu.vector_store %arg7[%169, %c0_79, %c0_80], %172 {strides = array<i32>} : memref<8x8x128xf32, #tpu.memory_space<vmem>>, vector<1x8x128xf32>,
    %c4_i32 = arith.constant 4 : i32
    %173 = arith.index_cast %c4_i32 : i32 to index
    %c0_81 = arith.constant 0 : index
    %c0_82 = arith.constant 0 : index
    %174 = vector.load %arg1[%173, %c0_81, %c0_82] : memref<8x8x18xf32, #tpu.memory_space<vmem>>, vector<1x8x18xf32>
    %175 = vector.shape_cast %174 : vector<1x8x18xf32> to vector<8x18xf32>
    %cst_83 = arith.constant dense<0.000000e+00> : vector<8x32xf32>
    %176 = tpu.matmul %175, %3, %cst_83 {dimension_numbers = #tpu.dot_dimension_numbers<[1], [0], [0], [1], [0, 0, 1, 1], [], []>} : vector<8x18xf32>, vector<18x32xf32>, vector<8x32xf32> -> vector<8x32xf32>
    %177 = vector.broadcast %6 : vector<1x32xf32> to vector<8x32xf32>
    %178 = arith.addf %176, %177 : vector<8x32xf32>
    %cst_84 = arith.constant 0.000000e+00 : f32
    %179 = vector.broadcast %cst_84 : f32 to vector<8x32xf32>
    %180 = arith.cmpf ogt, %178, %179 : vector<8x32xf32>
    %cst_85 = arith.constant 1.000000e-01 : f32
    %181 = vector.broadcast %cst_85 : f32 to vector<8x32xf32>
    %182 = arith.mulf %181, %178 : vector<8x32xf32>
    %183 = arith.select %180, %178, %182 : vector<8x32xi1>, vector<8x32xf32>
    %c0_86 = arith.constant 0 : index
    %c0_87 = arith.constant 0 : index
    %184 = vector.load %arg9[%c0_86, %c0_87] : memref<8x64xf32, #tpu.memory_space<vmem>>, vector<8x32xf32>
    tpu.vector_store %arg9[%c0_86, %c0_87], %183 {strides = array<i32>} : memref<8x64xf32, #tpu.memory_space<vmem>>, vector<8x32xf32>,
    %c0_88 = arith.constant 0 : index
    %c0_89 = arith.constant 0 : index
    %185 = vector.load %arg9[%c0_88, %c0_89] : memref<8x64xf32, #tpu.memory_space<vmem>>, vector<8x64xf32>
    %cst_90 = arith.constant dense<0.000000e+00> : vector<8x64xf32>
    %186 = tpu.matmul %185, %4, %cst_90 {dimension_numbers = #tpu.dot_dimension_numbers<[1], [0], [0], [1], [0, 0, 1, 1], [], []>} : vector<8x64xf32>, vector<64x64xf32>, vector<8x64xf32> -> vector<8x64xf32>
    %187 = vector.broadcast %7 : vector<1x64xf32> to vector<8x64xf32>
    %188 = arith.addf %186, %187 : vector<8x64xf32>
    %189 = vector.extract_strided_slice %188 {offsets = [0, 0], sizes = [8, 32], strides = [1, 1]} : vector<8x64xf32> to vector<8x32xf32>
    %190 = math.tanh %189 : vector<8x32xf32>
    %191 = vector.extract_strided_slice %188 {offsets = [0, 32], sizes = [8, 32], strides = [1, 1]} : vector<8x64xf32> to vector<8x32xf32>
    %cst_91 = arith.constant dense<0.000000e+00> : vector<8x16xf32>
    %192 = tpu.matmul %191, %5, %cst_91 {dimension_numbers = #tpu.dot_dimension_numbers<[1], [0], [0], [1], [0, 0, 1, 1], [], []>} : vector<8x32xf32>, vector<32x16xf32>, vector<8x16xf32> -> vector<8x16xf32>
    %193 = vector.broadcast %8 : vector<1x16xf32> to vector<8x16xf32>
    %194 = arith.addf %192, %193 : vector<8x16xf32>
    %195 = arith.negf %194 : vector<8x16xf32>
    %196 = math.exp %195 : vector<8x16xf32>
    %cst_92 = arith.constant 1.000000e+00 : f32
    %197 = vector.broadcast %cst_92 : f32 to vector<8x16xf32>
    %198 = arith.addf %197, %196 : vector<8x16xf32>
    %199 = arith.divf %197, %198 : vector<8x16xf32>
    %cst_93 = arith.constant dense<0.000000e+00> : vector<8xf32>
    %200 = vector.multi_reduction <add>, %199, %cst_93 [1] : vector<8x16xf32> to vector<8xf32>
    %201 = vector.shape_cast %200 : vector<8xf32> to vector<8x1xf32>
    %202 = vector.broadcast %201 : vector<8x1xf32> to vector<8x7xf32>
    %203 = vector.broadcast %9 : vector<1x7xf32> to vector<8x7xf32>
    %204 = arith.mulf %202, %203 : vector<8x7xf32>
    %205 = vector.broadcast %10 : vector<1x7xf32> to vector<8x7xf32>
    %206 = arith.addf %204, %205 : vector<8x7xf32>
    %c0_94 = arith.constant 0 : index
    %c32_95 = arith.constant 32 : index
    %207 = vector.load %arg9[%c0_94, %c32_95] : memref<8x64xf32, #tpu.memory_space<vmem>>, vector<8x32xf32>
    tpu.vector_store %arg9[%c0_94, %c32_95], %190 {strides = array<i32>} : memref<8x64xf32, #tpu.memory_space<vmem>>, vector<8x32xf32>,
    %208 = tpu.concatenate %206, %11, %194, %12 in 1 : vector<8x7xf32>, vector<8x1xf32>, vector<8x16xf32>, vector<8x104xf32> -> vector<8x128xf32>
    %209 = arith.index_cast %c4_i32 : i32 to index
    %c0_96 = arith.constant 0 : index
    %c0_97 = arith.constant 0 : index
    %210 = vector.load %arg7[%209, %c0_96, %c0_97] : memref<8x8x128xf32, #tpu.memory_space<vmem>>, vector<1x8x128xf32>
    %211 = vector.shape_cast %210 : vector<1x8x128xf32> to vector<8x128xf32>
    %212 = vector.shape_cast %208 : vector<8x128xf32> to vector<1x8x128xf32>
    tpu.vector_store %arg7[%209, %c0_96, %c0_97], %212 {strides = array<i32>} : memref<8x8x128xf32, #tpu.memory_space<vmem>>, vector<1x8x128xf32>,
    %c5_i32 = arith.constant 5 : i32
    %213 = arith.index_cast %c5_i32 : i32 to index
    %c0_98 = arith.constant 0 : index
    %c0_99 = arith.constant 0 : index
    %214 = vector.load %arg1[%213, %c0_98, %c0_99] : memref<8x8x18xf32, #tpu.memory_space<vmem>>, vector<1x8x18xf32>
    %215 = vector.shape_cast %214 : vector<1x8x18xf32> to vector<8x18xf32>
    %cst_100 = arith.constant dense<0.000000e+00> : vector<8x32xf32>
    %216 = tpu.matmul %215, %3, %cst_100 {dimension_numbers = #tpu.dot_dimension_numbers<[1], [0], [0], [1], [0, 0, 1, 1], [], []>} : vector<8x18xf32>, vector<18x32xf32>, vector<8x32xf32> -> vector<8x32xf32>
    %217 = vector.broadcast %6 : vector<1x32xf32> to vector<8x32xf32>
    %218 = arith.addf %216, %217 : vector<8x32xf32>
    %cst_101 = arith.constant 0.000000e+00 : f32
    %219 = vector.broadcast %cst_101 : f32 to vector<8x32xf32>
    %220 = arith.cmpf ogt, %218, %219 : vector<8x32xf32>
    %cst_102 = arith.constant 1.000000e-01 : f32
    %221 = vector.broadcast %cst_102 : f32 to vector<8x32xf32>
    %222 = arith.mulf %221, %218 : vector<8x32xf32>
    %223 = arith.select %220, %218, %222 : vector<8x32xi1>, vector<8x32xf32>
    %c0_103 = arith.constant 0 : index
    %c0_104 = arith.constant 0 : index
    %224 = vector.load %arg9[%c0_103, %c0_104] : memref<8x64xf32, #tpu.memory_space<vmem>>, vector<8x32xf32>
    tpu.vector_store %arg9[%c0_103, %c0_104], %223 {strides = array<i32>} : memref<8x64xf32, #tpu.memory_space<vmem>>, vector<8x32xf32>,
    %c0_105 = arith.constant 0 : index
    %c0_106 = arith.constant 0 : index
    %225 = vector.load %arg9[%c0_105, %c0_106] : memref<8x64xf32, #tpu.memory_space<vmem>>, vector<8x64xf32>
    %cst_107 = arith.constant dense<0.000000e+00> : vector<8x64xf32>
    %226 = tpu.matmul %225, %4, %cst_107 {dimension_numbers = #tpu.dot_dimension_numbers<[1], [0], [0], [1], [0, 0, 1, 1], [], []>} : vector<8x64xf32>, vector<64x64xf32>, vector<8x64xf32> -> vector<8x64xf32>
    %227 = vector.broadcast %7 : vector<1x64xf32> to vector<8x64xf32>
    %228 = arith.addf %226, %227 : vector<8x64xf32>
    %229 = vector.extract_strided_slice %228 {offsets = [0, 0], sizes = [8, 32], strides = [1, 1]} : vector<8x64xf32> to vector<8x32xf32>
    %230 = math.tanh %229 : vector<8x32xf32>
    %231 = vector.extract_strided_slice %228 {offsets = [0, 32], sizes = [8, 32], strides = [1, 1]} : vector<8x64xf32> to vector<8x32xf32>
    %cst_108 = arith.constant dense<0.000000e+00> : vector<8x16xf32>
    %232 = tpu.matmul %231, %5, %cst_108 {dimension_numbers = #tpu.dot_dimension_numbers<[1], [0], [0], [1], [0, 0, 1, 1], [], []>} : vector<8x32xf32>, vector<32x16xf32>, vector<8x16xf32> -> vector<8x16xf32>
    %233 = vector.broadcast %8 : vector<1x16xf32> to vector<8x16xf32>
    %234 = arith.addf %232, %233 : vector<8x16xf32>
    %235 = arith.negf %234 : vector<8x16xf32>
    %236 = math.exp %235 : vector<8x16xf32>
    %cst_109 = arith.constant 1.000000e+00 : f32
    %237 = vector.broadcast %cst_109 : f32 to vector<8x16xf32>
    %238 = arith.addf %237, %236 : vector<8x16xf32>
    %239 = arith.divf %237, %238 : vector<8x16xf32>
    %cst_110 = arith.constant dense<0.000000e+00> : vector<8xf32>
    %240 = vector.multi_reduction <add>, %239, %cst_110 [1] : vector<8x16xf32> to vector<8xf32>
    %241 = vector.shape_cast %240 : vector<8xf32> to vector<8x1xf32>
    %242 = vector.broadcast %241 : vector<8x1xf32> to vector<8x7xf32>
    %243 = vector.broadcast %9 : vector<1x7xf32> to vector<8x7xf32>
    %244 = arith.mulf %242, %243 : vector<8x7xf32>
    %245 = vector.broadcast %10 : vector<1x7xf32> to vector<8x7xf32>
    %246 = arith.addf %244, %245 : vector<8x7xf32>
    %c0_111 = arith.constant 0 : index
    %c32_112 = arith.constant 32 : index
    %247 = vector.load %arg9[%c0_111, %c32_112] : memref<8x64xf32, #tpu.memory_space<vmem>>, vector<8x32xf32>
    tpu.vector_store %arg9[%c0_111, %c32_112], %230 {strides = array<i32>} : memref<8x64xf32, #tpu.memory_space<vmem>>, vector<8x32xf32>,
    %248 = tpu.concatenate %246, %11, %234, %12 in 1 : vector<8x7xf32>, vector<8x1xf32>, vector<8x16xf32>, vector<8x104xf32> -> vector<8x128xf32>
    %249 = arith.index_cast %c5_i32 : i32 to index
    %c0_113 = arith.constant 0 : index
    %c0_114 = arith.constant 0 : index
    %250 = vector.load %arg7[%249, %c0_113, %c0_114] : memref<8x8x128xf32, #tpu.memory_space<vmem>>, vector<1x8x128xf32>
    %251 = vector.shape_cast %250 : vector<1x8x128xf32> to vector<8x128xf32>
    %252 = vector.shape_cast %248 : vector<8x128xf32> to vector<1x8x128xf32>
    tpu.vector_store %arg7[%249, %c0_113, %c0_114], %252 {strides = array<i32>} : memref<8x8x128xf32, #tpu.memory_space<vmem>>, vector<1x8x128xf32>,
    %c6_i32 = arith.constant 6 : i32
    %253 = arith.index_cast %c6_i32 : i32 to index
    %c0_115 = arith.constant 0 : index
    %c0_116 = arith.constant 0 : index
    %254 = vector.load %arg1[%253, %c0_115, %c0_116] : memref<8x8x18xf32, #tpu.memory_space<vmem>>, vector<1x8x18xf32>
    %255 = vector.shape_cast %254 : vector<1x8x18xf32> to vector<8x18xf32>
    %cst_117 = arith.constant dense<0.000000e+00> : vector<8x32xf32>
    %256 = tpu.matmul %255, %3, %cst_117 {dimension_numbers = #tpu.dot_dimension_numbers<[1], [0], [0], [1], [0, 0, 1, 1], [], []>} : vector<8x18xf32>, vector<18x32xf32>, vector<8x32xf32> -> vector<8x32xf32>
    %257 = vector.broadcast %6 : vector<1x32xf32> to vector<8x32xf32>
    %258 = arith.addf %256, %257 : vector<8x32xf32>
    %cst_118 = arith.constant 0.000000e+00 : f32
    %259 = vector.broadcast %cst_118 : f32 to vector<8x32xf32>
    %260 = arith.cmpf ogt, %258, %259 : vector<8x32xf32>
    %cst_119 = arith.constant 1.000000e-01 : f32
    %261 = vector.broadcast %cst_119 : f32 to vector<8x32xf32>
    %262 = arith.mulf %261, %258 : vector<8x32xf32>
    %263 = arith.select %260, %258, %262 : vector<8x32xi1>, vector<8x32xf32>
    %c0_120 = arith.constant 0 : index
    %c0_121 = arith.constant 0 : index
    %264 = vector.load %arg9[%c0_120, %c0_121] : memref<8x64xf32, #tpu.memory_space<vmem>>, vector<8x32xf32>
    tpu.vector_store %arg9[%c0_120, %c0_121], %263 {strides = array<i32>} : memref<8x64xf32, #tpu.memory_space<vmem>>, vector<8x32xf32>,
    %c0_122 = arith.constant 0 : index
    %c0_123 = arith.constant 0 : index
    %265 = vector.load %arg9[%c0_122, %c0_123] : memref<8x64xf32, #tpu.memory_space<vmem>>, vector<8x64xf32>
    %cst_124 = arith.constant dense<0.000000e+00> : vector<8x64xf32>
    %266 = tpu.matmul %265, %4, %cst_124 {dimension_numbers = #tpu.dot_dimension_numbers<[1], [0], [0], [1], [0, 0, 1, 1], [], []>} : vector<8x64xf32>, vector<64x64xf32>, vector<8x64xf32> -> vector<8x64xf32>
    %267 = vector.broadcast %7 : vector<1x64xf32> to vector<8x64xf32>
    %268 = arith.addf %266, %267 : vector<8x64xf32>
    %269 = vector.extract_strided_slice %268 {offsets = [0, 0], sizes = [8, 32], strides = [1, 1]} : vector<8x64xf32> to vector<8x32xf32>
    %270 = math.tanh %269 : vector<8x32xf32>
    %271 = vector.extract_strided_slice %268 {offsets = [0, 32], sizes = [8, 32], strides = [1, 1]} : vector<8x64xf32> to vector<8x32xf32>
    %cst_125 = arith.constant dense<0.000000e+00> : vector<8x16xf32>
    %272 = tpu.matmul %271, %5, %cst_125 {dimension_numbers = #tpu.dot_dimension_numbers<[1], [0], [0], [1], [0, 0, 1, 1], [], []>} : vector<8x32xf32>, vector<32x16xf32>, vector<8x16xf32> -> vector<8x16xf32>
    %273 = vector.broadcast %8 : vector<1x16xf32> to vector<8x16xf32>
    %274 = arith.addf %272, %273 : vector<8x16xf32>
    %275 = arith.negf %274 : vector<8x16xf32>
    %276 = math.exp %275 : vector<8x16xf32>
    %cst_126 = arith.constant 1.000000e+00 : f32
    %277 = vector.broadcast %cst_126 : f32 to vector<8x16xf32>
    %278 = arith.addf %277, %276 : vector<8x16xf32>
    %279 = arith.divf %277, %278 : vector<8x16xf32>
    %cst_127 = arith.constant dense<0.000000e+00> : vector<8xf32>
    %280 = vector.multi_reduction <add>, %279, %cst_127 [1] : vector<8x16xf32> to vector<8xf32>
    %281 = vector.shape_cast %280 : vector<8xf32> to vector<8x1xf32>
    %282 = vector.broadcast %281 : vector<8x1xf32> to vector<8x7xf32>
    %283 = vector.broadcast %9 : vector<1x7xf32> to vector<8x7xf32>
    %284 = arith.mulf %282, %283 : vector<8x7xf32>
    %285 = vector.broadcast %10 : vector<1x7xf32> to vector<8x7xf32>
    %286 = arith.addf %284, %285 : vector<8x7xf32>
    %c0_128 = arith.constant 0 : index
    %c32_129 = arith.constant 32 : index
    %287 = vector.load %arg9[%c0_128, %c32_129] : memref<8x64xf32, #tpu.memory_space<vmem>>, vector<8x32xf32>
    tpu.vector_store %arg9[%c0_128, %c32_129], %270 {strides = array<i32>} : memref<8x64xf32, #tpu.memory_space<vmem>>, vector<8x32xf32>,
    %288 = tpu.concatenate %286, %11, %274, %12 in 1 : vector<8x7xf32>, vector<8x1xf32>, vector<8x16xf32>, vector<8x104xf32> -> vector<8x128xf32>
    %289 = arith.index_cast %c6_i32 : i32 to index
    %c0_130 = arith.constant 0 : index
    %c0_131 = arith.constant 0 : index
    %290 = vector.load %arg7[%289, %c0_130, %c0_131] : memref<8x8x128xf32, #tpu.memory_space<vmem>>, vector<1x8x128xf32>
    %291 = vector.shape_cast %290 : vector<1x8x128xf32> to vector<8x128xf32>
    %292 = vector.shape_cast %288 : vector<8x128xf32> to vector<1x8x128xf32>
    tpu.vector_store %arg7[%289, %c0_130, %c0_131], %292 {strides = array<i32>} : memref<8x8x128xf32, #tpu.memory_space<vmem>>, vector<1x8x128xf32>,
    %c7_i32 = arith.constant 7 : i32
    %293 = arith.index_cast %c7_i32 : i32 to index
    %c0_132 = arith.constant 0 : index
    %c0_133 = arith.constant 0 : index
    %294 = vector.load %arg1[%293, %c0_132, %c0_133] : memref<8x8x18xf32, #tpu.memory_space<vmem>>, vector<1x8x18xf32>
    %295 = vector.shape_cast %294 : vector<1x8x18xf32> to vector<8x18xf32>
    %cst_134 = arith.constant dense<0.000000e+00> : vector<8x32xf32>
    %296 = tpu.matmul %295, %3, %cst_134 {dimension_numbers = #tpu.dot_dimension_numbers<[1], [0], [0], [1], [0, 0, 1, 1], [], []>} : vector<8x18xf32>, vector<18x32xf32>, vector<8x32xf32> -> vector<8x32xf32>
    %297 = vector.broadcast %6 : vector<1x32xf32> to vector<8x32xf32>
    %298 = arith.addf %296, %297 : vector<8x32xf32>
    %cst_135 = arith.constant 0.000000e+00 : f32
    %299 = vector.broadcast %cst_135 : f32 to vector<8x32xf32>
    %300 = arith.cmpf ogt, %298, %299 : vector<8x32xf32>
    %cst_136 = arith.constant 1.000000e-01 : f32
    %301 = vector.broadcast %cst_136 : f32 to vector<8x32xf32>
    %302 = arith.mulf %301, %298 : vector<8x32xf32>
    %303 = arith.select %300, %298, %302 : vector<8x32xi1>, vector<8x32xf32>
    %c0_137 = arith.constant 0 : index
    %c0_138 = arith.constant 0 : index
    %304 = vector.load %arg9[%c0_137, %c0_138] : memref<8x64xf32, #tpu.memory_space<vmem>>, vector<8x32xf32>
    tpu.vector_store %arg9[%c0_137, %c0_138], %303 {strides = array<i32>} : memref<8x64xf32, #tpu.memory_space<vmem>>, vector<8x32xf32>,
    %c0_139 = arith.constant 0 : index
    %c0_140 = arith.constant 0 : index
    %305 = vector.load %arg9[%c0_139, %c0_140] : memref<8x64xf32, #tpu.memory_space<vmem>>, vector<8x64xf32>
    %cst_141 = arith.constant dense<0.000000e+00> : vector<8x64xf32>
    %306 = tpu.matmul %305, %4, %cst_141 {dimension_numbers = #tpu.dot_dimension_numbers<[1], [0], [0], [1], [0, 0, 1, 1], [], []>} : vector<8x64xf32>, vector<64x64xf32>, vector<8x64xf32> -> vector<8x64xf32>
    %307 = vector.broadcast %7 : vector<1x64xf32> to vector<8x64xf32>
    %308 = arith.addf %306, %307 : vector<8x64xf32>
    %309 = vector.extract_strided_slice %308 {offsets = [0, 0], sizes = [8, 32], strides = [1, 1]} : vector<8x64xf32> to vector<8x32xf32>
    %310 = math.tanh %309 : vector<8x32xf32>
    %311 = vector.extract_strided_slice %308 {offsets = [0, 32], sizes = [8, 32], strides = [1, 1]} : vector<8x64xf32> to vector<8x32xf32>
    %cst_142 = arith.constant dense<0.000000e+00> : vector<8x16xf32>
    %312 = tpu.matmul %311, %5, %cst_142 {dimension_numbers = #tpu.dot_dimension_numbers<[1], [0], [0], [1], [0, 0, 1, 1], [], []>} : vector<8x32xf32>, vector<32x16xf32>, vector<8x16xf32> -> vector<8x16xf32>
    %313 = vector.broadcast %8 : vector<1x16xf32> to vector<8x16xf32>
    %314 = arith.addf %312, %313 : vector<8x16xf32>
    %315 = arith.negf %314 : vector<8x16xf32>
    %316 = math.exp %315 : vector<8x16xf32>
    %cst_143 = arith.constant 1.000000e+00 : f32
    %317 = vector.broadcast %cst_143 : f32 to vector<8x16xf32>
    %318 = arith.addf %317, %316 : vector<8x16xf32>
    %319 = arith.divf %317, %318 : vector<8x16xf32>
    %cst_144 = arith.constant dense<0.000000e+00> : vector<8xf32>
    %320 = vector.multi_reduction <add>, %319, %cst_144 [1] : vector<8x16xf32> to vector<8xf32>
    %321 = vector.shape_cast %320 : vector<8xf32> to vector<8x1xf32>
    %322 = vector.broadcast %321 : vector<8x1xf32> to vector<8x7xf32>
    %323 = vector.broadcast %9 : vector<1x7xf32> to vector<8x7xf32>
    %324 = arith.mulf %322, %323 : vector<8x7xf32>
    %325 = vector.broadcast %10 : vector<1x7xf32> to vector<8x7xf32>
    %326 = arith.addf %324, %325 : vector<8x7xf32>
    %c0_145 = arith.constant 0 : index
    %c32_146 = arith.constant 32 : index
    %327 = vector.load %arg9[%c0_145, %c32_146] : memref<8x64xf32, #tpu.memory_space<vmem>>, vector<8x32xf32>
    tpu.vector_store %arg9[%c0_145, %c32_146], %310 {strides = array<i32>} : memref<8x64xf32, #tpu.memory_space<vmem>>, vector<8x32xf32>,
    %328 = tpu.concatenate %326, %11, %314, %12 in 1 : vector<8x7xf32>, vector<8x1xf32>, vector<8x16xf32>, vector<8x104xf32> -> vector<8x128xf32>
    %329 = arith.index_cast %c7_i32 : i32 to index
    %c0_147 = arith.constant 0 : index
    %c0_148 = arith.constant 0 : index
    %330 = vector.load %arg7[%329, %c0_147, %c0_148] : memref<8x8x128xf32, #tpu.memory_space<vmem>>, vector<1x8x128xf32>
    %331 = vector.shape_cast %330 : vector<1x8x128xf32> to vector<8x128xf32>
    %332 = vector.shape_cast %328 : vector<8x128xf32> to vector<1x8x128xf32>
    tpu.vector_store %arg7[%329, %c0_147, %c0_148], %332 {strides = array<i32>} : memref<8x8x128xf32, #tpu.memory_space<vmem>>, vector<1x8x128xf32>,
    %c8_i32 = arith.constant 8 : i32
    %c0_149 = arith.constant 0 : index
    %c32_150 = arith.constant 32 : index
    %333 = vector.load %arg9[%c0_149, %c32_150] : memref<8x64xf32, #tpu.memory_space<vmem>>, vector<8x32xf32>
    %c0_151 = arith.constant 0 : index
    %c0_152 = arith.constant 0 : index
    %334 = vector.load %arg8[%c0_151, %c0_152] : memref<8x32xf32, #tpu.memory_space<vmem>>, vector<8x32xf32>
    tpu.vector_store %arg8[%c0_151, %c0_152], %333 {strides = array<i32>} : memref<8x32xf32, #tpu.memory_space<vmem>>, vector<8x32xf32>,
    return
  }
  func.func @transform_0(%arg0: i32) -> (i32, i32, i32) {
    %c0_i32 = arith.constant 0 : i32
    %c0_i32_0 = arith.constant 0 : i32
    %c0_i32_1 = arith.constant 0 : i32
    return %arg0, %c0_i32, %c0_i32_0 : i32, i32, i32
  }
  func.func @transform_1(%arg0: i32) -> (i32, i32) {
    %c0_i32 = arith.constant 0 : i32
    %c0_i32_0 = arith.constant 0 : i32
    %c0_i32_1 = arith.constant 0 : i32
    return %c0_i32, %c0_i32_0 : i32, i32
  }
  func.func @transform_2(%arg0: i32) -> (i32, i32) {
    %c0_i32 = arith.constant 0 : i32
    %c0_i32_0 = arith.constant 0 : i32
    %c0_i32_1 = arith.constant 0 : i32
    return %c0_i32, %c0_i32_0 : i32, i32
  }
  func.func @transform_3(%arg0: i32) -> (i32, i32) {
    %c0_i32 = arith.constant 0 : i32
    %c0_i32_0 = arith.constant 0 : i32
    %c0_i32_1 = arith.constant 0 : i32
    return %c0_i32, %c0_i32_0 : i32, i32
  }
  func.func @transform_4(%arg0: i32) -> (i32, i32) {
    %c0_i32 = arith.constant 0 : i32
    %c0_i32_0 = arith.constant 0 : i32
    %c0_i32_1 = arith.constant 0 : i32
    return %c0_i32, %c0_i32_0 : i32, i32
  }
  func.func @transform_5(%arg0: i32) -> (i32, i32) {
    %c0_i32 = arith.constant 0 : i32
    %c0_i32_0 = arith.constant 0 : i32
    %c0_i32_1 = arith.constant 0 : i32
    return %c0_i32, %c0_i32_0 : i32, i32
  }
  func.func @transform_6(%arg0: i32) -> (i32, i32, i32) {
    %c0_i32 = arith.constant 0 : i32
    %c0_i32_0 = arith.constant 0 : i32
    %c0_i32_1 = arith.constant 0 : i32
    return %arg0, %c0_i32, %c0_i32_0 : i32, i32, i32
  }
  func.func @transform_7(%arg0: i32) -> (i32, i32) {
    %c0_i32 = arith.constant 0 : i32
    %c0_i32_0 = arith.constant 0 : i32
    %c0_i32_1 = arith.constant 0 : i32
    return %c0_i32, %c0_i32_0 : i32, i32
  }
}

</mosaic_0001>

<bundles_post_ra>
// kernel: tpu_custom_call.1
= control target key start
LH: loop header
LB: loop body
LE: loop exit
PB: predicated region body
PF: predicated region fallthrough
CT: control target
= control target key end

     0   :  { %13 = vsyncpa [#allocation4], 0  ;;  %s3541_s0 = inlined_call_operand.hbm [shape: f32[8,8,18], index: 0, kind: input, shape index: {}]   ;;  %s3542_s1 = inlined_call_operand.vmem [shape: f32[8,32], index: 1, kind: input, shape index: {}]   ;;  %s3543_s2 = inlined_call_operand.vmem [shape: f32[18,32], index: 2, kind: input, shape index: {}]   ;;  %s3544_s3 = inlined_call_operand.hbm [shape: f32[64,64], index: 3, kind: input, shape index: {}]   ;;  %s3545_s4 = inlined_call_operand.vmem [shape: f32[32,16], index: 4, kind: input, shape index: {}]   ;;  %s3546_s5 = inlined_call_operand.vmem [shape: f32[8,128], index: 5, kind: input, shape index: {}]   ;;  %s3547_s6 = inlined_call_operand.hbm [shape: f32[8,8,128], index: 6, kind: output, shape index: {0}]   ;;  %s3548_s7 = inlined_call_operand.hbm [shape: f32[8,32], index: 7, kind: output, shape index: {1}]  }
   0x1   :  { %14 = vsyncpa [#allocation7], 0 }
   0x2   :  { %15 = vsyncpa [#allocation5], 0 }
   0x3   :  { %16 = vsyncpa [#allocation10], 0  ;;  %s3010_s24 = smov [#allocation3]   ;;  %s2914_s28 = scalar_lea.hbm %s3541_s0, 1024 }
   0x4   :  { %s22_s25 = sshll.u32 %s3010_s24, 4  ;;  %p2915_p0 = scmp.ne.s32.totalorder %s3541_s0, %s2914_s28  ;;  %s23_s25 = int_to_ptr.vmem [resolvable:$true] %s22_s25 }
   0x5   :  { %p2918_p1 = scmp.lt.u32.totalorder %s2914_s28, %s3541_s0 }
   0x7   :  { %p2920_p2 = pnand %p2918_p1, %p2915_p0 }
   0x9   :  { %2923 = shalt.err (!%p2920_p2)
}
   0xa   :  { %s2924_s10 = scalar_lea.vmem %s23_s25, 1024  ;;  %p2929_p4 = scmp.lt.s32.totalorder %s23_s25, %s23_s25 }
   0xb   :  { %p2925_p3 = scmp.ne.s32.totalorder %s23_s25, %s2924_s10  ;;  %p2930_p5 = scmp.lt.s32.totalorder %s2924_s10, %s2924_s10 }
   0xd   :  { %p2931_p6 = por %p2930_p5, %p2929_p4 }
   0xf   :  { %p2932_p7 = pnand %p2931_p6, %p2925_p3 }
  0x11   :  { %2935 = shalt.err (!%p2932_p7)
}
  0x12   :  { %s3011_s11 = smov 128   ;;  %s3012_s12 = smov 8  }
  0x13   :  { %28 = dma.hbm_to_vmem [thread:$0]  %s3541_s0, 1024, %s23_s25, [#allocation4], %s3011_s11, %s3011_s11, %s3012_s12  }
  0x14   :  { %s3013_s15 = smov [#allocation6]   ;;  %s2936_s19 = scalar_lea.hbm %s3544_s3, 1024 }
  0x15   :  { %s38_s16 = sshll.u32 %s3013_s15, 4  ;;  %p2937_p8 = scmp.ne.s32.totalorder %s3544_s3, %s2936_s19  ;;  %s39_s16 = int_to_ptr.vmem [resolvable:$true] %s38_s16 }
  0x16   :  { %p2940_p9 = scmp.lt.u32.totalorder %s2936_s19, %s3544_s3 }
  0x18   :  { %p2942_p10 = pnand %p2940_p9, %p2937_p8 }
  0x1a   :  { %2945 = shalt.err (!%p2942_p10)
}
  0x1b   :  { %s2946_s24 = scalar_lea.vmem %s39_s16, 1024  ;;  %p2951_p12 = scmp.lt.s32.totalorder %s39_s16, %s39_s16 }
  0x1c   :  { %p2947_p11 = scmp.ne.s32.totalorder %s39_s16, %s2946_s24  ;;  %p2952_p13 = scmp.lt.s32.totalorder %s2946_s24, %s2946_s24 }
  0x1e   :  { %p2953_p0 = por %p2952_p13, %p2951_p12 }
  0x20   :  { %p2954_p1 = pnand %p2953_p0, %p2947_p11 }
  0x22   :  { %2957 = shalt.err (!%p2954_p1)
}
  0x23   :  { %44 = dma.hbm_to_vmem [thread:$0]  %s3544_s3, 1024, %s39_s16, [#allocation7], %s3011_s11, %s3011_s11, %s3012_s12  }
  0x24   :  { %3002 = dma.done.wait [#allocation4], 1024  }
  0x25   :  { %3003 = vsyncadd [#allocation4], 4294966272 }
  0x26   :  { %3004 = dma.done.wait [#allocation7], 1024  }
  0x27   :  { %3005 = vsyncadd [#allocation7], 4294966272  ;;  %v3014_v0 = vmov 0.0|0.0   ;;  %vm3015_vm0 = vmmov 0   ;;  %v3016_v1 = vmov 0.0   ;;  %v66_v2 = vld [vmem:[%s3543_s2] sm:$0xff] }
  0x28   :  { %2687 = vmatprep.subr.bf16.mxu1 %v3014_v0  ;;  %2381 = vmatprep.mubr.msk.f32.mxu1 %vm3015_vm0, %v3016_v1  ;;  %v67_v3 = vld [vmem:[%s3543_s2 + $0x8] sm:$0xff]  ;;  %v59_v5 = vld [vmem:[%s3542_s1] sm:$0xff]  ;;  %s3017_s8 = smov 32   ;;  %v70_v7 = vld [vmem:[#allocation6 + $0x8] sm:$0xff]  ;;  %vm95_vm1 = vcmask 1041408   ;;  %vm91_vm2 = vcmask 146432  }
  0x29   :  { %2702 = vmatprep.subr.bf16.mxu0 %v3014_v0  ;;  %2411 = vmatprep.mubr.msk.f32.mxu0 %vm3015_vm0, %v3016_v1  ;;  %v3103_v4 = vpack.c.bf16 %v67_v3, %v66_v2  ;;  %v69_v6 = vld [vmem:[#allocation6] sm:$0xff]  ;;  %v3114_v8 = vld [vmem:[%s3543_s2 + $0x10] sm:$0x3]  ;;  %v71_v11 = vld [vmem:[#allocation6 + $0x10] sm:$0xff]  ;;  %vm64_vm3 = vcmask 523520   ;;  %vm172_vm5 = vcmask 261120  }
  0x2a   :  { %61 = vrot.lane.b32.xlu0 %v59_v5, %s3017_s8  ;;  %v86_v9 = vld [vmem:[#allocation3] sm:$0xff]  ;;  %v3116_v10 = vpack.c.bf16 %v70_v7, %v69_v6  ;;  %v72_v12 = vld [vmem:[#allocation6 + $0x18] sm:$0xff]  ;;  %v74_v15 = vld [vmem:[#allocation6 + $0x28] sm:$0xff]  ;;  %vm179_vm6 = vcmask 523264   ;;  %vm339_vm13 = vcmask 130048   ;;  %vm363_vm15 = vcmask 56320  }
  0x2b   :  { %2689 = vmatpush3.bf16.msra.mxu1 %v3103_v4  ;;  %v3126_v13 = vpack.c.bf16 %v72_v12, %v71_v11  ;;  %v73_v14 = vld [vmem:[#allocation6 + $0x20] sm:$0xff]  ;;  %v75_v17 = vld [vmem:[#allocation6 + $0x30] sm:$0xff]  ;;  %v76_v18 = vld [vmem:[#allocation6 + $0x38] sm:$0xff] }
  0x2c   :  { %2379 = vmatprep.subr.mxu1 %v3016_v1  ;;  %v3130_v16 = vpack.c.bf16 %v74_v15, %v73_v14  ;;  %v3133_v19 = vpack.c.bf16 %v76_v18, %v75_v17  ;;  %v3142_v21 = vld [vmem:[%s3546_s5] ss:$0 sm:$0xff]  ;;  %v78_v29 = vld [vmem:[%s3545_s4 + $0x8] sm:$0xff]  ;;  %v79_v30 = vld [vmem:[%s3545_s4 + $0x10] sm:$0xff] }
  0x2d   :  { %v77_v28 = vld [vmem:[%s3545_s4] sm:$0xff]  ;;  %v80_v32 = vld [vmem:[%s3545_s4 + $0x18] sm:$0xff]  ;;  %s3018_s4 = smov 96   ;;  %v371_v40 = vld [vmem:[#allocation3 + $0x8] sm:$0xff] }
  0x2e   :  { %v3166_v31 = vpack.c.bf16 %v78_v29, %v77_v28  ;;  %v3172_v33 = vpack.c.bf16 %v80_v32, %v79_v30  ;;  %v3180_v34 = vld [vmem:[%s3546_s5 + $0x1] ss:$0 sm:$0xff]  ;;  %v625_v55 = vld [vmem:[#allocation3 + $0x10] sm:$0xff]  ;;  %v1133_v30 = vld [vmem:[#allocation3 + $0x20] sm:$0xff] }
  0x2f   :  { %2380 = vmatpush3.msk.msra.mxu1 %vm95_vm1, %v3114_v8  ;;  %v879_v11 = vld [vmem:[#allocation3 + $0x18] sm:$0xff] }
  0x30   :  { %2382 = vmatmul.mubr.msk.f32.vlgmr.msra.gmra.mrb[0].mxu1 %vm91_vm2, %v86_v9  ;;  %2690 = vmatprep.subr.bf16.mxu1 %v3014_v0 }
  0x31   :  { %2692 = vmatpush3.bf16.msra.mxu1 %v3116_v10  ;;  %2400 = vmatprep.mubr.msk.f32.mxu1 %vm3015_vm0, %v3016_v1 }
  0x32   :  { %2693 = vmatprep.subr.bf16.mxu1 %v3014_v0  ;;  %2704 = vmatpush3.bf16.msra.mxu0 %v3166_v31 }
  0x33   :  { %2705 = vmatprep.subr.bf16.mxu0 %v3014_v0 }
  0x35   :  { %2695 = vmatpush3.bf16.msra.mxu1 %v3126_v13 }
  0x36   :  { %2696 = vmatprep.subr.bf16.mxu1 %v3014_v0  ;;  %2707 = vmatpush3.bf16.msra.mxu0 %v3172_v33 }
  0x37   :  { %2708 = vmatprep.subr.bf16.mxu0 %v3014_v0 }
  0x39   :  { %2698 = vmatpush3.bf16.msra.mxu1 %v3130_v16 }
  0x3a   :  { %2699 = vmatprep.subr.bf16.mxu1 %v3014_v0 }
  0x3d   :  { %2701 = vmatpush3.bf16.msra.mxu1 %v3133_v19 }
  0x3e   :  { %2711 = vmatprep.subr.bf16.mxu1 %v3014_v0 }
  0x9c   :  { %v62_v20 = vpop.permute.xlu0 %61 }
  0x9d   :  { %65 = vst.msk [vmem:[#allocation2] sm:$0xff] %vm64_vm3, %v62_v20 }
 0x103   :  { %v165_v22 = vpop.f32.mrb[0].mxu1 }
 0x104   :  { %v166_v23 = vadd.f32 %v3142_v21, %v165_v22  ;;  %v2383_v24 = vpop.f32.mrb[1].mxu1 }
 0x106   :  { %vm169_vm4 = vcmp.gt.f32.partialorder %v166_v23, 0.0  ;;  %v170_v25 = vmul.f32 0.1, %v166_v23 }
 0x108   :  { %v171_v26 = vsel %vm169_vm4, %v166_v23, %v170_v25 }
 0x109   :  { %173 = vst.msk [vmem:[#allocation2] sm:$0xff] %vm172_vm5, %v171_v26 }
 0x110   :  { %v174_v27 = vld [vmem:[#allocation2] sm:$0xff] }
 0x111   :  { %2401 = vmatmul.mubr.msk.f32.vlgmr.msra.gmra.mrb[2].mxu1 %vm179_vm6, %v174_v27 }
 0x112   :  { %2713 = vmatpush3.bf16.msra.mxu1 %v3116_v10  ;;  %2439 = vmatprep.mubr.msk.f32.mxu1 %vm3015_vm0, %v3016_v1 }
 0x113   :  { %2714 = vmatprep.subr.bf16.mxu1 %v3014_v0 }
 0x116   :  { %2716 = vmatpush3.bf16.msra.mxu1 %v3126_v13 }
 0x117   :  { %2717 = vmatprep.subr.bf16.mxu1 %v3014_v0 }
 0x11a   :  { %2719 = vmatpush3.bf16.msra.mxu1 %v3130_v16 }
 0x11b   :  { %2720 = vmatprep.subr.bf16.mxu1 %v3014_v0 }
 0x11e   :  { %2722 = vmatpush3.bf16.msra.mxu1 %v3133_v19 }
 0x11f   :  { %2732 = vmatprep.subr.bf16.mxu1 %v3014_v0 }
 0x1e4   :  { %v249_v35 = vpop.f32.mrb[2].mxu1 }
 0x1e5   :  { %v250_v36 = vadd.f32 %v3180_v34, %v249_v35  ;;  %v2402_v37 = vpop.f32.mrb[3].mxu1 }
 0x1e7   :  { %2866 = vtanh.f32 %v250_v36  ;;  %259 = vrot.lane.b32.xlu0 %v250_v36, %s3018_s4 }
 0x1f1   :  { %v2867_v38 = vpop.eup %2866 }
 0x1f2   :  { %354 = vrot.lane.b32.xlu1 %v2867_v38, %s3017_s8 }
 0x259   :  { %v260_v39 = vpop.permute.xlu0 %259 }
 0x25a   :  { %2412 = vmatmul.mubr.msk.f32.vlgmr.msra.gmra.mrb[0].mxu0 %vm172_vm5, %v260_v39 }
 0x25b   :  { %2710 = vmatpush3.bf16.msra.mxu0 %v3103_v4  ;;  %2420 = vmatprep.mubr.msk.f32.mxu0 %vm3015_vm0, %v3016_v1 }
 0x25c   :  { %2418 = vmatprep.subr.mxu0 %v3016_v1 }
 0x25f   :  { %2419 = vmatpush3.msk.msra.mxu0 %vm95_vm1, %v3114_v8 }
 0x260   :  { %2421 = vmatmul.mubr.msk.f32.vlgmr.msra.gmra.mrb[2].mxu0 %vm91_vm2, %v371_v40  ;;  %2723 = vmatprep.subr.bf16.mxu0 %v3014_v0 }
 0x261   :  { %2725 = vmatpush3.bf16.msra.mxu0 %v3166_v31  ;;  %2450 = vmatprep.mubr.msk.f32.mxu0 %vm3015_vm0, %v3016_v1 }
 0x262   :  { %2726 = vmatprep.subr.bf16.mxu0 %v3014_v0 }
 0x264   :  { %v355_v41 = vpop.permute.xlu1 %354 }
 0x265   :  { %358 = vst.msk [vmem:[#allocation2] sm:$0xff] %vm64_vm3, %v355_v41  ;;  %2728 = vmatpush3.bf16.msra.mxu0 %v3172_v33 }
 0x266   :  { %2729 = vmatprep.subr.bf16.mxu0 %v3014_v0 }
 0x32d   :  { %v3201_v42 = vpop.f32.mrb[0].mxu0 }
 0x32e   :  { %v2413_v43 = vpop.f32.mrb[1].mxu0 }
 0x333   :  { %v441_v44 = vpop.f32.mrb[2].mxu0 }
 0x334   :  { %v442_v45 = vadd.f32 %v3142_v21, %v441_v44  ;;  %v2422_v46 = vpop.f32.mrb[3].mxu0 }
 0x336   :  { %vm445_vm7 = vcmp.gt.f32.partialorder %v442_v45, 0.0  ;;  %v446_v47 = vmul.f32 0.1, %v442_v45 }
 0x338   :  { %v447_v48 = vsel %vm445_vm7, %v442_v45, %v446_v47 }
 0x339   :  { %448 = vst.msk [vmem:[#allocation2] sm:$0xff] %vm172_vm5, %v447_v48 }
 0x340   :  { %v449_v49 = vld [vmem:[#allocation2] sm:$0xff] }
 0x341   :  { %2440 = vmatmul.mubr.msk.f32.vlgmr.msra.gmra.mrb[4].mxu1 %vm179_vm6, %v449_v49  ;;  %v1387_v49 = vld [vmem:[#allocation3 + $0x28] sm:$0xff] }
 0x342   :  { %2734 = vmatpush3.bf16.msra.mxu1 %v3116_v10  ;;  %2478 = vmatprep.mubr.msk.f32.mxu1 %vm3015_vm0, %v3016_v1 }
 0x343   :  { %2735 = vmatprep.subr.bf16.mxu1 %v3014_v0 }
 0x346   :  { %2737 = vmatpush3.bf16.msra.mxu1 %v3126_v13 }
 0x347   :  { %2738 = vmatprep.subr.bf16.mxu1 %v3014_v0 }
 0x34a   :  { %2740 = vmatpush3.bf16.msra.mxu1 %v3130_v16 }
 0x34b   :  { %2741 = vmatprep.subr.bf16.mxu1 %v3014_v0 }
 0x34e   :  { %2743 = vmatpush3.bf16.msra.mxu1 %v3133_v19 }
 0x34f   :  { %2765 = vmatprep.subr.bf16.mxu1 %v3014_v0 }
 0x414   :  { %v519_v50 = vpop.f32.mrb[4].mxu1 }
 0x415   :  { %v520_v51 = vadd.f32 %v3180_v34, %v519_v50  ;;  %v2441_v52 = vpop.f32.mrb[5].mxu1 }
 0x417   :  { %2868 = vtanh.f32 %v520_v51  ;;  %525 = vrot.lane.b32.xlu1 %v520_v51, %s3018_s4 }
 0x421   :  { %v2869_v53 = vpop.eup %2868 }
 0x422   :  { %611 = vrot.lane.b32.xlu0 %v2869_v53, %s3017_s8 }
 0x489   :  { %v526_v54 = vpop.permute.xlu1 %525 }
 0x48a   :  { %2451 = vmatmul.mubr.msk.f32.vlgmr.msra.gmra.mrb[4].mxu0 %vm172_vm5, %v526_v54 }
 0x48b   :  { %2731 = vmatpush3.bf16.msra.mxu0 %v3103_v4  ;;  %2459 = vmatprep.mubr.msk.f32.mxu0 %vm3015_vm0, %v3016_v1 }
 0x48c   :  { %2457 = vmatprep.subr.mxu0 %v3016_v1 }
 0x48f   :  { %2458 = vmatpush3.msk.msra.mxu0 %vm95_vm1, %v3114_v8 }
 0x490   :  { %2460 = vmatmul.mubr.msk.f32.vlgmr.msra.gmra.mrb[6].mxu0 %vm91_vm2, %v625_v55  ;;  %2744 = vmatprep.subr.bf16.mxu0 %v3014_v0 }
 0x491   :  { %2746 = vmatpush3.bf16.msra.mxu0 %v3166_v31  ;;  %2489 = vmatprep.mubr.msk.f32.mxu0 %vm3015_vm0, %v3016_v1 }
 0x492   :  { %2747 = vmatprep.subr.bf16.mxu0 %v3014_v0 }
 0x494   :  { %v612_v56 = vpop.permute.xlu0 %611 }
 0x495   :  { %614 = vst.msk [vmem:[#allocation2] sm:$0xff] %vm64_vm3, %v612_v56  ;;  %2749 = vmatpush3.bf16.msra.mxu0 %v3172_v33 }
 0x496   :  { %2750 = vmatprep.subr.bf16.mxu0 %v3014_v0 }
 0x55d   :  { %v3235_v57 = vpop.f32.mrb[4].mxu0 }
 0x55e   :  { %v2452_v58 = vpop.f32.mrb[5].mxu0 }
 0x563   :  { %v695_v59 = vpop.f32.mrb[6].mxu0 }
 0x564   :  { %v696_v60 = vadd.f32 %v3142_v21, %v695_v59  ;;  %v2461_v61 = vpop.f32.mrb[7].mxu0 }
 0x566   :  { %vm699_vm8 = vcmp.gt.f32.partialorder %v696_v60, 0.0  ;;  %v700_v62 = vmul.f32 0.1, %v696_v60 }
 0x568   :  { %v701_v63 = vsel %vm699_vm8, %v696_v60, %v700_v62 }
 0x569   :  { %702 = vst.msk [vmem:[#allocation2] sm:$0xff] %vm172_vm5, %v701_v63 }
 0x570   :  { %v703_v2 = vld [vmem:[#allocation2] sm:$0xff] }
 0x571   :  { %2479 = vmatmul.mubr.msk.f32.vlgmr.msra.gmra.mrb[6].mxu1 %vm179_vm6, %v703_v2 }
 0x572   :  { %2767 = vmatpush3.bf16.msra.mxu1 %v3166_v31  ;;  %2528 = vmatprep.mubr.msk.f32.mxu1 %vm3015_vm0, %v3016_v1 }
 0x573   :  { %2768 = vmatprep.subr.bf16.mxu1 %v3014_v0 }
 0x576   :  { %2770 = vmatpush3.bf16.msra.mxu1 %v3172_v33 }
 0x577   :  { %2771 = vmatprep.subr.bf16.mxu1 %v3014_v0 }
 0x644   :  { %v773_v3 = vpop.f32.mrb[6].mxu1 }
 0x645   :  { %v774_v5 = vadd.f32 %v3180_v34, %v773_v3  ;;  %v2480_v6 = vpop.f32.mrb[7].mxu1  ;;  %v1641_v3 = vld [vmem:[#allocation3 + $0x30] sm:$0xff] }
 0x647   :  { %2870 = vtanh.f32 %v774_v5  ;;  %779 = vrot.lane.b32.xlu1 %v774_v5, %s3018_s4 }
 0x651   :  { %v2871_v7 = vpop.eup %2870 }
 0x652   :  { %865 = vrot.lane.b32.xlu0 %v2871_v7, %s3017_s8 }
 0x6b9   :  { %v780_v9 = vpop.permute.xlu1 %779 }
 0x6ba   :  { %2490 = vmatmul.mubr.msk.f32.vlgmr.msra.gmra.mrb[8].mxu0 %vm172_vm5, %v780_v9 }
 0x6bb   :  { %2752 = vmatpush3.bf16.msra.mxu0 %v3103_v4  ;;  %2498 = vmatprep.mubr.msk.f32.mxu0 %vm3015_vm0, %v3016_v1 }
 0x6bc   :  { %2496 = vmatprep.subr.mxu0 %v3016_v1 }
 0x6bf   :  { %2497 = vmatpush3.msk.msra.mxu0 %vm95_vm1, %v3114_v8 }
 0x6c0   :  { %2499 = vmatmul.mubr.msk.f32.vlgmr.msra.gmra.mrb[10].mxu0 %vm91_vm2, %v879_v11  ;;  %2753 = vmatprep.subr.bf16.mxu0 %v3014_v0 }
 0x6c1   :  { %2755 = vmatpush3.bf16.msra.mxu0 %v3116_v10  ;;  %2517 = vmatprep.mubr.msk.f32.mxu0 %vm3015_vm0, %v3016_v1 }
 0x6c2   :  { %2756 = vmatprep.subr.bf16.mxu0 %v3014_v0 }
 0x6c4   :  { %v866_v12 = vpop.permute.xlu0 %865 }
 0x6c5   :  { %868 = vst.msk [vmem:[#allocation2] sm:$0xff] %vm64_vm3, %v866_v12  ;;  %2758 = vmatpush3.bf16.msra.mxu0 %v3126_v13 }
 0x6c6   :  { %2759 = vmatprep.subr.bf16.mxu0 %v3014_v0 }
 0x6c9   :  { %2761 = vmatpush3.bf16.msra.mxu0 %v3130_v16 }
 0x6ca   :  { %2762 = vmatprep.subr.bf16.mxu0 %v3014_v0 }
 0x6cd   :  { %2764 = vmatpush3.bf16.msra.mxu0 %v3133_v19 }
 0x6ce   :  { %2786 = vmatprep.subr.bf16.mxu0 %v3014_v0 }
 0x78d   :  { %v3269_v14 = vpop.f32.mrb[8].mxu0 }
 0x78e   :  { %v2491_v15 = vpop.f32.mrb[9].mxu0 }
 0x793   :  { %v949_v17 = vpop.f32.mrb[10].mxu0 }
 0x794   :  { %v950_v18 = vadd.f32 %v3142_v21, %v949_v17  ;;  %v2500_v20 = vpop.f32.mrb[11].mxu0 }
 0x796   :  { %vm953_vm9 = vcmp.gt.f32.partialorder %v950_v18, 0.0  ;;  %v954_v22 = vmul.f32 0.1, %v950_v18 }
 0x798   :  { %v955_v23 = vsel %vm953_vm9, %v950_v18, %v954_v22 }
 0x799   :  { %956 = vst.msk [vmem:[#allocation2] sm:$0xff] %vm172_vm5, %v955_v23 }
 0x7a0   :  { %v957_v24 = vld [vmem:[#allocation2] sm:$0xff] }
 0x7a1   :  { %2518 = vmatmul.mubr.msk.f32.vlgmr.msra.gmra.mrb[12].mxu0 %vm179_vm6, %v957_v24  ;;  %v3385_v24 = vld [vmem:[%s3546_s5 + $0x2] ss:$0 sm:$0xff] }
 0x7a2   :  { %2788 = vmatpush3.bf16.msra.mxu0 %v3166_v31  ;;  %2567 = vmatprep.mubr.msk.f32.mxu0 %vm3015_vm0, %v3016_v1 }
 0x7a3   :  { %2789 = vmatprep.subr.bf16.mxu0 %v3014_v0 }
 0x7a6   :  { %2791 = vmatpush3.bf16.msra.mxu0 %v3172_v33 }
 0x7a7   :  { %2792 = vmatprep.subr.bf16.mxu0 %v3014_v0 }
 0x874   :  { %v1027_v25 = vpop.f32.mrb[12].mxu0 }
 0x875   :  { %v1028_v26 = vadd.f32 %v3180_v34, %v1027_v25  ;;  %v2519_v27 = vpop.f32.mrb[13].mxu0 }
 0x877   :  { %2872 = vtanh.f32 %v1028_v26  ;;  %1033 = vrot.lane.b32.xlu1 %v1028_v26, %s3018_s4 }
 0x881   :  { %v2873_v28 = vpop.eup %2872 }
 0x882   :  { %1119 = vrot.lane.b32.xlu0 %v2873_v28, %s3017_s8 }
 0x8e9   :  { %v1034_v29 = vpop.permute.xlu1 %1033 }
 0x8ea   :  { %2529 = vmatmul.mubr.msk.f32.vlgmr.msra.gmra.mrb[8].mxu1 %vm172_vm5, %v1034_v29 }
 0x8eb   :  { %2773 = vmatpush3.bf16.msra.mxu1 %v3103_v4  ;;  %2537 = vmatprep.mubr.msk.f32.mxu1 %vm3015_vm0, %v3016_v1 }
 0x8ec   :  { %2535 = vmatprep.subr.mxu1 %v3016_v1 }
 0x8ef   :  { %2536 = vmatpush3.msk.msra.mxu1 %vm95_vm1, %v3114_v8 }
 0x8f0   :  { %2538 = vmatmul.mubr.msk.f32.vlgmr.msra.gmra.mrb[10].mxu1 %vm91_vm2, %v1133_v30  ;;  %2774 = vmatprep.subr.bf16.mxu1 %v3014_v0 }
 0x8f1   :  { %2776 = vmatpush3.bf16.msra.mxu1 %v3116_v10  ;;  %2556 = vmatprep.mubr.msk.f32.mxu1 %vm3015_vm0, %v3016_v1 }
 0x8f2   :  { %2777 = vmatprep.subr.bf16.mxu1 %v3014_v0 }
 0x8f4   :  { %v1120_v32 = vpop.permute.xlu0 %1119 }
 0x8f5   :  { %1122 = vst.msk [vmem:[#allocation2] sm:$0xff] %vm64_vm3, %v1120_v32  ;;  %2779 = vmatpush3.bf16.msra.mxu1 %v3126_v13  ;;  %v596_v32 = vadd.f32 %v3385_v24, %v3235_v57  ;;  %v1895_v57 = vld [vmem:[#allocation3 + $0x38] sm:$0xff] }
 0x8f6   :  { %2780 = vmatprep.subr.bf16.mxu1 %v3014_v0 }
 0x8f9   :  { %2782 = vmatpush3.bf16.msra.mxu1 %v3130_v16 }
 0x8fa   :  { %2783 = vmatprep.subr.bf16.mxu1 %v3014_v0 }
 0x8fd   :  { %2785 = vmatpush3.bf16.msra.mxu1 %v3133_v19 }
 0x8fe   :  { %2807 = vmatprep.subr.bf16.mxu1 %v3014_v0 }
 0x9bd   :  { %v3303_v35 = vpop.f32.mrb[8].mxu1 }
 0x9be   :  { %v2530_v36 = vpop.f32.mrb[9].mxu1  ;;  %v3397_v30 = vadd.f32 %v3385_v24, %v3303_v35 }
 0x9c3   :  { %v1203_v37 = vpop.f32.mrb[10].mxu1 }
 0x9c4   :  { %v1204_v38 = vadd.f32 %v3142_v21, %v1203_v37  ;;  %v2539_v39 = vpop.f32.mrb[11].mxu1 }
 0x9c6   :  { %vm1207_vm10 = vcmp.gt.f32.partialorder %v1204_v38, 0.0  ;;  %v1208_v40 = vmul.f32 0.1, %v1204_v38 }
 0x9c8   :  { %v1209_v41 = vsel %vm1207_vm10, %v1204_v38, %v1208_v40 }
 0x9c9   :  { %1210 = vst.msk [vmem:[#allocation2] sm:$0xff] %vm172_vm5, %v1209_v41 }
 0x9d0   :  { %v1211_v43 = vld [vmem:[#allocation2] sm:$0xff] }
 0x9d1   :  { %2557 = vmatmul.mubr.msk.f32.vlgmr.msra.gmra.mrb[12].mxu1 %vm179_vm6, %v1211_v43 }
 0x9d2   :  { %2809 = vmatpush3.bf16.msra.mxu1 %v3166_v31  ;;  %2606 = vmatprep.mubr.msk.f32.mxu1 %vm3015_vm0, %v3016_v1 }
 0x9d3   :  { %2810 = vmatprep.subr.bf16.mxu1 %v3014_v0 }
 0x9d6   :  { %2812 = vmatpush3.bf16.msra.mxu1 %v3172_v33 }
 0x9d7   :  { %2813 = vmatprep.subr.bf16.mxu1 %v3014_v0 }
 0xaa4   :  { %v1281_v44 = vpop.f32.mrb[12].mxu1 }
 0xaa5   :  { %v1282_v45 = vadd.f32 %v3180_v34, %v1281_v44  ;;  %v2558_v46 = vpop.f32.mrb[13].mxu1 }
 0xaa7   :  { %2874 = vtanh.f32 %v1282_v45  ;;  %1287 = vrot.lane.b32.xlu1 %v1282_v45, %s3018_s4 }
 0xab1   :  { %v2875_v47 = vpop.eup %2874 }
 0xab2   :  { %1373 = vrot.lane.b32.xlu0 %v2875_v47, %s3017_s8 }
 0xb19   :  { %v1288_v48 = vpop.permute.xlu1 %1287 }
 0xb1a   :  { %2568 = vmatmul.mubr.msk.f32.vlgmr.msra.gmra.mrb[14].mxu0 %vm172_vm5, %v1288_v48 }
 0xb1b   :  { %2794 = vmatpush3.bf16.msra.mxu0 %v3103_v4  ;;  %2576 = vmatprep.mubr.msk.f32.mxu0 %vm3015_vm0, %v3016_v1 }
 0xb1c   :  { %2574 = vmatprep.subr.mxu0 %v3016_v1 }
 0xb1f   :  { %2575 = vmatpush3.msk.msra.mxu0 %vm95_vm1, %v3114_v8 }
 0xb20   :  { %2577 = vmatmul.mubr.msk.f32.vlgmr.msra.gmra.mrb[16].mxu0 %vm91_vm2, %v1387_v49  ;;  %2795 = vmatprep.subr.bf16.mxu0 %v3014_v0 }
 0xb21   :  { %2797 = vmatpush3.bf16.msra.mxu0 %v3116_v10  ;;  %2595 = vmatprep.mubr.msk.f32.mxu0 %vm3015_vm0, %v3016_v1 }
 0xb22   :  { %2798 = vmatprep.subr.bf16.mxu0 %v3014_v0 }
 0xb24   :  { %v1374_v50 = vpop.permute.xlu0 %1373 }
 0xb25   :  { %1376 = vst.msk [vmem:[#allocation2] sm:$0xff] %vm64_vm3, %v1374_v50  ;;  %2800 = vmatpush3.bf16.msra.mxu0 %v3126_v13 }
 0xb26   :  { %2801 = vmatprep.subr.bf16.mxu0 %v3014_v0 }
 0xb29   :  { %2803 = vmatpush3.bf16.msra.mxu0 %v3130_v16 }
 0xb2a   :  { %2804 = vmatprep.subr.bf16.mxu0 %v3014_v0 }
 0xb2d   :  { %2806 = vmatpush3.bf16.msra.mxu0 %v3133_v19 }
 0xb2e   :  { %2828 = vmatprep.subr.bf16.mxu0 %v3014_v0 }
 0xbed   :  { %v3337_v51 = vpop.f32.mrb[14].mxu0 }
 0xbee   :  { %v2569_v52 = vpop.f32.mrb[15].mxu0  ;;  %v3406_v35 = vadd.f32 %v3385_v24, %v3337_v51  ;;  %v2200_v51 = vmul.f32 -1.442695, %v596_v32 }
 0xbef   :  { %v850_v52 = vadd.f32 %v3385_v24, %v3269_v14 }
 0xbf0   :  { %v2215_v14 = vmul.f32 -1.442695, %v3406_v35 }
 0xbf3   :  { %v1457_v53 = vpop.f32.mrb[16].mxu0 }
 0xbf4   :  { %v1458_v54 = vadd.f32 %v3142_v21, %v1457_v53  ;;  %v2578_v55 = vpop.f32.mrb[17].mxu0  ;;  %v2205_v53 = vmul.f32 -1.442695, %v850_v52 }
 0xbf6   :  { %vm1461_vm11 = vcmp.gt.f32.partialorder %v1458_v54, 0.0  ;;  %v1462_v56 = vmul.f32 0.1, %v1458_v54 }
 0xbf8   :  { %v1463_v58 = vsel %vm1461_vm11, %v1458_v54, %v1462_v56 }
 0xbf9   :  { %1464 = vst.msk [vmem:[#allocation2] sm:$0xff] %vm172_vm5, %v1463_v58 }
 0xc00   :  { %v1465_v59 = vld [vmem:[#allocation2] sm:$0xff] }
 0xc01   :  { %2596 = vmatmul.mubr.msk.f32.vlgmr.msra.gmra.mrb[18].mxu0 %vm179_vm6, %v1465_v59 }
 0xc02   :  { %2830 = vmatpush3.bf16.msra.mxu0 %v3166_v31  ;;  %2645 = vmatprep.mubr.msk.f32.mxu0 %vm3015_vm0, %v3016_v1 }
 0xc03   :  { %2831 = vmatprep.subr.bf16.mxu0 %v3014_v0 }
 0xc06   :  { %2833 = vmatpush3.bf16.msra.mxu0 %v3172_v33 }
 0xc07   :  { %2834 = vmatprep.subr.bf16.mxu0 %v3014_v0 }
 0xcd4   :  { %v1535_v60 = vpop.f32.mrb[18].mxu0 }
 0xcd5   :  { %v1536_v61 = vadd.f32 %v3180_v34, %v1535_v60  ;;  %v2597_v62 = vpop.f32.mrb[19].mxu0 }
 0xcd7   :  { %2876 = vtanh.f32 %v1536_v61  ;;  %1541 = vrot.lane.b32.xlu1 %v1536_v61, %s3018_s4 }
 0xce1   :  { %v2877_v63 = vpop.eup %2876 }
 0xce2   :  { %1627 = vrot.lane.b32.xlu0 %v2877_v63, %s3017_s8 }
 0xd49   :  { %v1542_v2 = vpop.permute.xlu1 %1541 }
 0xd4a   :  { %2607 = vmatmul.mubr.msk.f32.vlgmr.msra.gmra.mrb[14].mxu1 %vm172_vm5, %v1542_v2 }
 0xd4b   :  { %2815 = vmatpush3.bf16.msra.mxu1 %v3103_v4  ;;  %2615 = vmatprep.mubr.msk.f32.mxu1 %vm3015_vm0, %v3016_v1 }
 0xd4c   :  { %2613 = vmatprep.subr.mxu1 %v3016_v1 }
 0xd4f   :  { %2614 = vmatpush3.msk.msra.mxu1 %vm95_vm1, %v3114_v8 }
 0xd50   :  { %2616 = vmatmul.mubr.msk.f32.vlgmr.msra.gmra.mrb[16].mxu1 %vm91_vm2, %v1641_v3  ;;  %2816 = vmatprep.subr.bf16.mxu1 %v3014_v0 }
 0xd51   :  { %2818 = vmatpush3.bf16.msra.mxu1 %v3116_v10  ;;  %2634 = vmatprep.mubr.msk.f32.mxu1 %vm3015_vm0, %v3016_v1 }
 0xd52   :  { %2819 = vmatprep.subr.bf16.mxu1 %v3014_v0 }
 0xd54   :  { %v1628_v5 = vpop.permute.xlu0 %1627 }
 0xd55   :  { %1630 = vst.msk [vmem:[#allocation2] sm:$0xff] %vm64_vm3, %v1628_v5  ;;  %2821 = vmatpush3.bf16.msra.mxu1 %v3126_v13  ;;  %v3453_v5 = vld [vmem:[%s3546_s5 + $0x3] ss:$0 sm:$0xff] }
 0xd56   :  { %2822 = vmatprep.subr.bf16.mxu1 %v3014_v0 }
 0xd59   :  { %2824 = vmatpush3.bf16.msra.mxu1 %v3130_v16 }
 0xd5a   :  { %2825 = vmatprep.subr.bf16.mxu1 %v3014_v0 }
 0xd5d   :  { %2827 = vmatpush3.bf16.msra.mxu1 %v3133_v19 }
 0xd5e   :  { %2849 = vmatprep.subr.bf16.mxu1 %v3014_v0 }
 0xe1d   :  { %v3371_v6 = vpop.f32.mrb[14].mxu1 }
 0xe1e   :  { %v2608_v7 = vpop.f32.mrb[15].mxu1 }
 0xe23   :  { %v1711_v9 = vpop.f32.mrb[16].mxu1 }
 0xe24   :  { %v1712_v11 = vadd.f32 %v3142_v21, %v1711_v9  ;;  %v2617_v12 = vpop.f32.mrb[17].mxu1 }
 0xe26   :  { %vm1715_vm12 = vcmp.gt.f32.partialorder %v1712_v11, 0.0  ;;  %v1716_v15 = vmul.f32 0.1, %v1712_v11 }
 0xe28   :  { %v1717_v17 = vsel %vm1715_vm12, %v1712_v11, %v1716_v15  ;;  %v3459_v11 = vld [vmem:[%s3546_s5 + $0x4] ss:$0 sm:$0xff]  ;;  %s3019_s5 = smov [#allocation9]  }
 0xe29   :  { %1718 = vst.msk [vmem:[#allocation2] sm:$0xff] %vm172_vm5, %v1717_v17  ;;  %v1612_v17 = vadd.f32 %v3385_v24, %v3371_v6  ;;  %s2172_s3 = sshll.u32 %s3019_s5, 4  ;;  %s2173_s3 = int_to_ptr.vmem [resolvable:$true] %s2172_s3 }
 0xe2a   :  { %s2958_s28 = scalar_lea.vmem %s2173_s3, 128  ;;  %p2963_p3 = scmp.lt.s32.totalorder %s2173_s3, %s2173_s3 }
 0xe2b   :  { %p2959_p2 = scmp.ne.s32.totalorder %s2173_s3, %s2958_s28  ;;  %p2964_p4 = scmp.lt.s32.totalorder %s2958_s28, %s2958_s28 }
 0xe2d   :  { %p2965_p5 = por %p2964_p4, %p2963_p3 }
 0xe2f   :  { %p2966_p6 = pnand %p2965_p5, %p2959_p2 }
 0xe30   :  { %v1719_v18 = vld [vmem:[#allocation2] sm:$0xff] }
 0xe31   :  { %2635 = vmatmul.mubr.msk.f32.vlgmr.msra.gmra.mrb[18].mxu1 %vm179_vm6, %v1719_v18 }
 0xe32   :  { %2851 = vmatpush3.bf16.msra.mxu1 %v3166_v31  ;;  %2684 = vmatprep.mubr.msk.f32.mxu1 %vm3015_vm0, %v3016_v1  ;;  %v3390_v31 = vadd.f32 %v3385_v24, %v3201_v42  ;;  %v2210_v42 = vmul.f32 -1.442695, %v3397_v30 }
 0xe33   :  { %2852 = vmatprep.subr.bf16.mxu1 %v3014_v0 }
 0xe34   :  { %v2193_v25 = vmul.f32 -1.442695, %v3390_v31 }
 0xe36   :  { %2854 = vmatpush3.bf16.msra.mxu1 %v3172_v33 }
 0xf04   :  { %v1789_v20 = vpop.f32.mrb[18].mxu1 }
 0xf05   :  { %v1790_v22 = vadd.f32 %v3180_v34, %v1789_v20  ;;  %v2636_v23 = vpop.f32.mrb[19].mxu1 }
 0xf06   :  { %v2220_v23 = vmul.f32 -1.442695, %v1612_v17 }
 0xf07   :  { %2878 = vtanh.f32 %v1790_v22  ;;  %1795 = vrot.lane.b32.xlu1 %v1790_v22, %s3018_s4 }
 0xf08   :  { %2880 = vpow2.f32 %v2193_v25 }
 0xf11   :  { %v2879_v26 = vpop.eup %2878 }
 0xf12   :  { %1881 = vrot.lane.b32.xlu0 %v2879_v26, %s3017_s8  ;;  %v2881_v33 = vpop.eup %2880 }
 0xf13   :  { %v336_v27 = vadd.f32 1.0, %v2881_v33 }
 0xf15   :  { %2882 = vrcp.f32 %v336_v27 }
 0xf16   :  { %2884 = vpow2.f32 %v2210_v42 }
 0xf1f   :  { %v2883_v28 = vpop.eup %2882 }
 0xf20   :  { %v340_v29 = vsel %vm339_vm13, %v2883_v28, 0.0  ;;  %v2885_v36 = vpop.eup %2884 }
 0xf21   :  { %v1110_v37 = vadd.f32 1.0, %v2885_v36 }
 0xf23   :  { %2886 = vrcp.f32 %v1110_v37 }
 0xf2d   :  { %v2887_v38 = vpop.eup %2886 }
 0xf2e   :  { %v1113_v39 = vsel %vm339_vm13, %v2887_v38, 0.0 }
 0xf31   :  { %341 = vadd.xlane.f32.xlu0 %v340_v29 }
 0xf47   :  { %616 = vrot.lane.b32.xlu0 %v596_v32, %s3012_s12 }
 0xf66   :  { %1114 = vadd.xlane.f32.xlu0 %v1113_v39 }
 0xf79   :  { %v1796_v40 = vpop.permute.xlu1 %1795 }
 0xf7a   :  { %2646 = vmatmul.mubr.msk.f32.vlgmr.msra.gmra.mrb[20].mxu0 %vm172_vm5, %v1796_v40 }
 0xf7b   :  { %2836 = vmatpush3.bf16.msra.mxu0 %v3103_v4  ;;  %2654 = vmatprep.mubr.msk.f32.mxu0 %vm3015_vm0, %v3016_v1 }
 0xf7c   :  { %1378 = vrot.lane.b32.xlu0 %v3406_v35, %s3012_s12  ;;  %2652 = vmatprep.subr.mxu0 %v3016_v1 }
 0xf7f   :  { %2653 = vmatpush3.msk.msra.mxu0 %vm95_vm1, %v3114_v8  ;;  %vm367_vm1 = vcmask 195584  }
 0xf80   :  { %2655 = vmatmul.mubr.msk.f32.vlgmr.msra.gmra.mrb[22].mxu0 %vm91_vm2, %v1895_v57  ;;  %2837 = vmatprep.subr.bf16.mxu0 %v3014_v0 }
 0xf81   :  { %2839 = vmatpush3.bf16.msra.mxu0 %v3116_v10  ;;  %2673 = vmatprep.mubr.msk.f32.mxu0 %vm3015_vm0, %v3016_v1  ;;  %vm365_vm0 = vcmask 64512  }
 0xf82   :  { %2840 = vmatprep.subr.bf16.mxu0 %v3014_v0 }
 0xf84   :  { %v1882_v4 = vpop.permute.xlu0 %1881 }
 0xf85   :  { %1884 = vst.msk [vmem:[#allocation2] sm:$0xff] %vm64_vm3, %v1882_v4  ;;  %2842 = vmatpush3.bf16.msra.mxu0 %v3126_v13 }
 0xf86   :  { %2843 = vmatprep.subr.bf16.mxu0 %v3014_v0 }
 0xf89   :  { %2845 = vmatpush3.bf16.msra.mxu0 %v3130_v16 }
 0xf8a   :  { %2846 = vmatprep.subr.bf16.mxu0 %v3014_v0 }
 0xf8d   :  { %2848 = vmatpush3.bf16.msra.mxu0 %v3133_v19 }
 0xfbe   :  { %v342_v7 = vpop.xlane.xlu0 %341 }
 0xfbf   :  { %v347_v9 = vmul.f32 %v3453_v5, %v342_v7 }
 0xfc1   :  { %v352_v12 = vadd.f32 %v3459_v11, %v347_v9 }
 0xfc2   :  { %v617_v28 = vpop.permute.xlu0 %616 }
 0xfc3   :  { %v364_v22 = vsel %vm363_vm15, %v352_v12, 0.0 }
0x104d   :  { %v1865_v8 = vpop.f32.mrb[20].mxu0 }
0x104e   :  { %v3430_v10 = vadd.f32 %v3385_v24, %v1865_v8  ;;  %v2647_v1 = vpop.f32.mrb[21].mxu0 }
0x1050   :  { %v2225_v41 = vmul.f32 -1.442695, %v3430_v10 }
0x1052   :  { %2888 = vpow2.f32 %v2225_v41 }
0x1053   :  { %v1965_v43 = vpop.f32.mrb[22].mxu0 }
0x1054   :  { %v1966_v44 = vadd.f32 %v3142_v21, %v1965_v43  ;;  %v2656_v13 = vpop.f32.mrb[23].mxu0 }
0x1056   :  { %vm1969_vm14 = vcmp.gt.f32.partialorder %v1966_v44, 0.0  ;;  %v1970_v45 = vmul.f32 0.1, %v1966_v44 }
0x1058   :  { %v1971_v46 = vsel %vm1969_vm14, %v1966_v44, %v1970_v45 }
0x1059   :  { %1972 = vst.msk [vmem:[#allocation2] sm:$0xff] %vm172_vm5, %v1971_v46 }
0x105c   :  { %v2889_v0 = vpop.eup %2888 }
0x105d   :  { %v1872_v16 = vadd.f32 1.0, %v2889_v0 }
0x105f   :  { %2890 = vrcp.f32 %v1872_v16 }
0x1060   :  { %v1973_v19 = vld [vmem:[#allocation2] sm:$0xff]  ;;  %2892 = vpow2.f32 %v2200_v51 }
0x1061   :  { %2674 = vmatmul.mubr.msk.f32.vlgmr.msra.gmra.mrb[24].mxu0 %vm179_vm6, %v1973_v19  ;;  %2894 = vpow2.f32 %v2205_v53 }
0x1069   :  { %v2891_v47 = vpop.eup %2890 }
0x106a   :  { %v1875_v48 = vsel %vm339_vm13, %v2891_v47, 0.0  ;;  %v2893_v54 = vpop.eup %2892 }
0x106b   :  { %1876 = vadd.xlane.f32.xlu0 %v1875_v48  ;;  %v602_v55 = vadd.f32 1.0, %v2893_v54  ;;  %v2895_v56 = vpop.eup %2894 }
0x106c   :  { %v856_v58 = vadd.f32 1.0, %v2895_v56 }
0x106d   :  { %2896 = vrcp.f32 %v602_v55 }
0x106e   :  { %2898 = vrcp.f32 %v856_v58 }
0x106f   :  { %2900 = vpow2.f32 %v2215_v14 }
0x1134   :  { %v2043_v49 = vpop.f32.mrb[24].mxu0 }
0x1135   :  { %v2044_v50 = vadd.f32 %v3180_v34, %v2043_v49  ;;  %v2675_v21 = vpop.f32.mrb[25].mxu0  ;;  %v2897_v34 = vpop.eup %2896 }
0x1136   :  { %v605_v59 = vsel %vm339_vm13, %v2897_v34, 0.0  ;;  %v2899_v60 = vpop.eup %2898 }
0x1137   :  { %2049 = vrot.lane.b32.xlu1 %v2044_v50, %s3018_s4  ;;  %v859_v61 = vsel %vm339_vm13, %v2899_v60, 0.0  ;;  %v2901_v62 = vpop.eup %2900 }
0x1138   :  { %v1364_v63 = vadd.f32 1.0, %v2901_v62 }
0x113a   :  { %2902 = vrcp.f32 %v1364_v63 }
0x113b   :  { %360 = vrot.lane.b32.xlu1 %v3390_v31, %s3012_s12  ;;  %2904 = vtanh.f32 %v2044_v50 }
0x113c   :  { %2906 = vpow2.f32 %v2220_v23 }
0x1144   :  { %v2903_v2 = vpop.eup %2902 }
0x1145   :  { %v1367_v3 = vsel %vm339_vm13, %v2903_v2, 0.0  ;;  %v2905_v18 = vpop.eup %2904 }
0x1146   :  { %v2907_v26 = vpop.eup %2906 }
0x1147   :  { %v1618_v6 = vadd.f32 1.0, %v2907_v26 }
0x1149   :  { %2908 = vrcp.f32 %v1618_v6 }
0x1153   :  { %v2909_v33 = vpop.eup %2908 }
0x1154   :  { %v1621_v27 = vsel %vm339_vm13, %v2909_v33, 0.0 }
0x115f   :  { %606 = vadd.xlane.f32.xlu1 %v605_v59 }
0x1163   :  { %860 = vadd.xlane.f32.xlu1 %v859_v61 }
0x1174   :  { %870 = vrot.lane.b32.xlu1 %v850_v52, %s3012_s12 }
0x1178   :  { %1124 = vrot.lane.b32.xlu1 %v3397_v30, %s3012_s12  ;;  %v1115_v30 = vpop.xlane.xlu0 %1114 }
0x1179   :  { %v1116_v36 = vmul.f32 %v3453_v5, %v1115_v30 }
0x117b   :  { %v1117_v4 = vadd.f32 %v3459_v11, %v1116_v36 }
0x117c   :  { %v1379_v47 = vpop.permute.xlu0 %1378 }
0x117d   :  { %v1127_v44 = vsel %vm363_vm15, %v1117_v4, 0.0 }
0x1180   :  { %v1877_v51 = vpop.xlane.xlu0 %1876 }
0x1181   :  { %v1878_v52 = vmul.f32 %v3453_v5, %v1877_v51 }
0x1183   :  { %v1879_v56 = vadd.f32 %v3459_v11, %v1878_v52 }
0x1185   :  { %v1889_v14 = vsel %vm363_vm15, %v1879_v56, 0.0 }
0x119c   :  { %1368 = vadd.xlane.f32.xlu1 %v1367_v3 }
0x11a9   :  { %v2050_v15 = vpop.permute.xlu1 %2049 }
0x11aa   :  { %2685 = vmatmul.mubr.msk.f32.vlgmr.msra.gmra.mrb[20].mxu1 %vm172_vm5, %v2050_v15 }
0x11ad   :  { %v361_v20 = vpop.permute.xlu1 %360  ;;  %2135 = vrot.lane.b32.xlu1 %v2905_v18, %s3017_s8 }
0x11ae   :  { %v366_v31 = vsel %vm365_vm0, %v364_v22, %v361_v20 }
0x11af   :  { %v368_v25 = vsel %vm367_vm1, %v366_v31, 0.0 }
0x11b0   :  { %369 = vst [vmem:[#allocation8] sm:$0xff] %v368_v25 }
0x11d1   :  { %1622 = vadd.xlane.f32.xlu1 %v1621_v27 }
0x11e2   :  { %1632 = vrot.lane.b32.xlu1 %v1612_v17, %s3012_s12 }
0x11e6   :  { %1886 = vrot.lane.b32.xlu1 %v3430_v10, %s3012_s12 }
0x11ec   :  { %v607_v29 = vpop.xlane.xlu1 %606 }
0x11ed   :  { %v608_v42 = vmul.f32 %v3453_v5, %v607_v29 }
0x11ef   :  { %v609_v32 = vadd.f32 %v3459_v11, %v608_v42 }
0x11f0   :  { %v861_v37 = vpop.xlane.xlu1 %860 }
0x11f1   :  { %v619_v38 = vsel %vm363_vm15, %v609_v32, 0.0  ;;  %v862_v39 = vmul.f32 %v3453_v5, %v861_v37 }
0x11f2   :  { %v620_v40 = vsel %vm365_vm0, %v619_v38, %v617_v28 }
0x11f3   :  { %v621_v35 = vsel %vm367_vm1, %v620_v40, 0.0  ;;  %v863_v57 = vadd.f32 %v3459_v11, %v862_v39 }
0x11f4   :  { %623 = vst [vmem:[#allocation8 + $0x8] sm:$0xff] %v621_v35  ;;  %v871_v8 = vpop.permute.xlu1 %870 }
0x11f5   :  { %v873_v10 = vsel %vm363_vm15, %v863_v57, 0.0 }
0x11f6   :  { %v874_v1 = vsel %vm365_vm0, %v873_v10, %v871_v8 }
0x11f7   :  { %v875_v41 = vsel %vm367_vm1, %v874_v1, 0.0 }
0x11f8   :  { %877 = vst [vmem:[#allocation8 + $0x10] sm:$0xff] %v875_v41  ;;  %v1125_v43 = vpop.permute.xlu1 %1124 }
0x11f9   :  { %v1128_v13 = vsel %vm365_vm0, %v1127_v44, %v1125_v43 }
0x11fa   :  { %v1129_v45 = vsel %vm367_vm1, %v1128_v13, 0.0 }
0x11fb   :  { %1131 = vst [vmem:[#allocation8 + $0x18] sm:$0xff] %v1129_v45 }
0x1229   :  { %v1369_v46 = vpop.xlane.xlu1 %1368 }
0x122a   :  { %v1370_v0 = vmul.f32 %v3453_v5, %v1369_v46 }
0x122c   :  { %v1371_v16 = vadd.f32 %v3459_v11, %v1370_v0 }
0x122d   :  { %v2136_v19 = vpop.permute.xlu1 %2135 }
0x122e   :  { %v1381_v48 = vsel %vm363_vm15, %v1371_v16, 0.0  ;;  %2138 = vst.msk [vmem:[#allocation2] sm:$0xff] %vm64_vm3, %v2136_v19 }
0x122f   :  { %v1382_v49 = vsel %vm365_vm0, %v1381_v48, %v1379_v47 }
0x1230   :  { %v1383_v50 = vsel %vm367_vm1, %v1382_v49, 0.0 }
0x1231   :  { %1385 = vst [vmem:[#allocation8 + $0x20] sm:$0xff] %v1383_v50 }
0x1235   :  { %v2148_v21 = vld [vmem:[#allocation2] sm:$0xff] }
0x1236   :  { %2150 = vrot.lane.b32.xlu0 %v2148_v21, %s3018_s4 }
0x125e   :  { %v1623_v53 = vpop.xlane.xlu1 %1622 }
0x125f   :  { %v1624_v54 = vmul.f32 %v3453_v5, %v1623_v53 }
0x1261   :  { %v1625_v55 = vadd.f32 %v3459_v11, %v1624_v54 }
0x1262   :  { %v1633_v58 = vpop.permute.xlu1 %1632 }
0x1263   :  { %v1635_v34 = vsel %vm363_vm15, %v1625_v55, 0.0 }
0x1264   :  { %v1636_v59 = vsel %vm365_vm0, %v1635_v34, %v1633_v58 }
0x1265   :  { %v1637_v60 = vsel %vm367_vm1, %v1636_v59, 0.0 }
0x1266   :  { %1639 = vst [vmem:[#allocation8 + $0x28] sm:$0xff] %v1637_v60  ;;  %v1887_v61 = vpop.permute.xlu1 %1886 }
0x1267   :  { %v1890_v62 = vsel %vm365_vm0, %v1889_v14, %v1887_v61 }
0x1268   :  { %v1891_v63 = vsel %vm367_vm1, %v1890_v62, 0.0 }
0x1269   :  { %1893 = vst [vmem:[#allocation8 + $0x30] sm:$0xff] %v1891_v63 }
0x127d   :  { %v2119_v2 = vpop.f32.mrb[20].mxu1 }
0x127e   :  { %v2120_v3 = vadd.f32 %v3385_v24, %v2119_v2  ;;  %v2686_v7 = vpop.f32.mrb[21].mxu1 }
0x1280   :  { %v2230_v9 = vmul.f32 -1.442695, %v2120_v3 }
0x1282   :  { %2910 = vpow2.f32 %v2230_v9 }
0x128c   :  { %v2911_v12 = vpop.eup %2910 }
0x128d   :  { %v2126_v15 = vadd.f32 1.0, %v2911_v12 }
0x128f   :  { %2912 = vrcp.f32 %v2126_v15 }
0x1299   :  { %v2913_v17 = vpop.eup %2912 }
0x129a   :  { %v2129_v18 = vsel %vm339_vm13, %v2913_v17, 0.0 }
0x129b   :  { %2130 = vadd.xlane.f32.xlu1 %v2129_v18 }
0x12a8   :  { %v2151_v20 = vpop.permute.xlu0 %2150 }
0x12a9   :  { %2153 = vst.msk [vmem:[#allocation9] sm:$0xff] %vm172_vm5, %v2151_v20 }
0x12ac   :  { %2140 = vrot.lane.b32.xlu1 %v2120_v3, %s3012_s12 }
0x12ad   :  { %2969 = shalt.err (!%p2966_p6)
}
0x12ae   :  { %s2970_s8 = scalar_lea.hbm %s3548_s7, 128 }
0x12af   :  { %p2971_p7 = scmp.ne.s32.totalorder %s3548_s7, %s2970_s8  ;;  %p2974_p8 = scmp.lt.u32.totalorder %s2970_s8, %s3548_s7 }
0x12b1   :  { %p2976_p9 = pnand %p2974_p8, %p2971_p7 }
0x12b3   :  { %2979 = shalt.err (!%p2976_p9)
}
0x12b4   :  { %2175 = dma.vmem_to_hbm [thread:$0]  %s2173_s3, 128, %s3548_s7, [#allocation10]  }
0x12b5   :  { %s3020_s15 = smov [#allocation8]  }
0x12b6   :  { %s2159_s16 = sshll.u32 %s3020_s15, 4  ;;  %s2160_s16 = int_to_ptr.vmem [resolvable:$true] %s2159_s16 }
0x12b7   :  { %s2980_s17 = scalar_lea.vmem %s2160_s16, 1024  ;;  %p2985_p11 = scmp.lt.s32.totalorder %s2160_s16, %s2160_s16 }
0x12b8   :  { %p2981_p10 = scmp.ne.s32.totalorder %s2160_s16, %s2980_s17  ;;  %p2986_p12 = scmp.lt.s32.totalorder %s2980_s17, %s2980_s17 }
0x12ba   :  { %p2987_p13 = por %p2986_p12, %p2985_p11 }
0x12bc   :  { %p2988_p0 = pnand %p2987_p13, %p2981_p10 }
0x1328   :  { %v2131_v24 = vpop.xlane.xlu1 %2130 }
0x1329   :  { %v2132_v22 = vmul.f32 %v3453_v5, %v2131_v24 }
0x132b   :  { %v2133_v23 = vadd.f32 %v3459_v11, %v2132_v22 }
0x132c   :  { %v2141_v31 = vpop.permute.xlu1 %2140 }
0x132d   :  { %v2143_v25 = vsel %vm363_vm15, %v2133_v23, 0.0 }
0x132e   :  { %v2144_v26 = vsel %vm365_vm0, %v2143_v25, %v2141_v31 }
0x132f   :  { %v2145_v6 = vsel %vm367_vm1, %v2144_v26, 0.0 }
0x1330   :  { %2147 = vst [vmem:[#allocation8 + $0x38] sm:$0xff] %v2145_v6 }
0x1331   :  { %2991 = shalt.err (!%p2988_p0)
}
0x1332   :  { %s2992_s19 = scalar_lea.hbm %s3547_s6, 1024 }
0x1333   :  { %p2993_p1 = scmp.ne.s32.totalorder %s3547_s6, %s2992_s19  ;;  %p2996_p2 = scmp.lt.u32.totalorder %s2992_s19, %s3547_s6 }
0x1335   :  { %p2998_p3 = pnand %p2996_p2, %p2993_p1 }
0x1337   :  { %3001 = shalt.err (!%p2998_p3)
}
0x1338   :  { %2165 = dma.vmem_to_hbm [thread:$0]  %s2160_s16, 1024, %s3547_s6, [#allocation5], %s3011_s11, %s3011_s11, %s3012_s12  }
0x1339   :  { %3006 = dma.done.wait [#allocation5], 1024  }
0x133a   :  { %3007 = vsyncadd [#allocation5], 4294966272 }
0x133b   :  { %3008 = dma.done.wait [#allocation10], 128  }
0x133c   :  { %3009 = vsyncadd [#allocation10], 4294967168 }
0x133d   :  { %2182 = vsyncpa [#allocation4], 1 }
0x133e   :  { %2183 = vsyncpa [#allocation7], 1 }
0x133f   :  { %2184 = vsyncpa [#allocation5], 1 }
0x1340   :  { %2185 = vsyncpa [#allocation10], 1 }

</bundles_post_ra>
